<compile_context>
chip_gen: v5e
topology: v5e:2x2
jax: 0.10.0
libtpu: 0.0.40
codegen_flags: <defaults>
</compile_context>

<pallas_src>
import functools
import math

import jax
import jax.numpy as jnp
from jax import lax
from jax.experimental import pallas as pl
from jax.experimental.pallas import tpu as pltpu


# ----------------------------------------------------------------------------
# Pallas kernel: one grid step == `time_chunk` timesteps of the recurrence.
# Grid = (batch_tiles [parallel], time_chunks [arbitrary]); hidden state lives
# in a VMEM scratch buffer that persists across the sequential time axis.
# Per timestep: 2 bf16 MXU matmuls + VPU/EUP gate math.
# ----------------------------------------------------------------------------
def tpgru_recurrence_kernel(
    xin_ref,    # (C, TB, 3H) f32 : precomputed input-side pre-acts [z|r|h]
    mask_ref,   # (C, TB, 1)  f32
    tph_ref,    # (TB, 3H)    f32 : topic @ [tp2zr_h | tp2h_h] (time-invariant)
    wh1_ref,    # (H, 3H)     bf16: [h2z | h2r | h2h] fused first stage
    wh2_ref,    # (3H, 3H)    bf16: block-diag(htp2z, htp2r, htp2h)
    out_ref,    # (C, TB, H)  f32
    state_ref,  # (TB, H)     f32 : final hidden state
    h_scratch,  # (TB, H)     f32 VMEM scratch, persists across time chunks
):
    t = pl.program_id(1)
    C = xin_ref.shape[0]
    H3 = xin_ref.shape[2]
    H = H3 // 3
    H2 = 2 * H

    @pl.when(t == 0)
    def _():
        h_scratch[...] = jnp.zeros_like(h_scratch)

    # Hoist constant loads out of the unrolled time loop.
    w_h1 = wh1_ref[...]
    w_h2 = wh2_ref[...]
    tp_h = tph_ref[...]

    def step(i, h_prev):
        pre_x = xin_ref[i]                      # (TB, 3H) f32
        m = mask_ref[i]                         # (TB, 1)  f32
        # first stage (fused): h @ [h2z|h2r|h2h], bf16 operands, f32 acc
        s1 = jnp.dot(h_prev.astype(w_h1.dtype), w_h1,
                     preferred_element_type=jnp.float32)
        # topic modulation, then fused block-diagonal second stage
        s1 = (s1 * tp_h).astype(w_h2.dtype)
        htp = jnp.dot(s1, w_h2, preferred_element_type=jnp.float32)  # (TB,3H)

        zr = jax.nn.sigmoid(pre_x[:, :H2] + htp[:, :H2])
        z = zr[:, :H]
        r = zr[:, H:]
        h_cand = jnp.tanh(pre_x[:, H2:] + r * htp[:, H2:])
        h_new = (1.0 - z) * h_cand + z * h_prev
        h_new = m * h_new + (1.0 - m) * h_prev

        out_ref[i] = h_new.astype(out_ref.dtype)
        return h_new

    h_last = lax.fori_loop(0, C, step, h_scratch[...], unroll=True)
    h_scratch[...] = h_last

    @pl.when(t == pl.num_programs(1) - 1)
    def _():
        state_ref[...] = h_last.astype(state_ref.dtype)


# ----------------------------------------------------------------------------
# One-time parameter preparation: transpose to (in, out), split the fused "zr"
# weights, fuse per-gate weights along the output dim / block-diagonally, and
# cast to bf16.  Call once; reuse the result for every forward call.
# ----------------------------------------------------------------------------
def _block_diag3(a, b, c):
    H = a.shape[0]
    out = jnp.zeros((3 * H, 3 * H), a.dtype)
    out = out.at[:H, :H].set(a)
    out = out.at[H:2 * H, H:2 * H].set(b)
    out = out.at[2 * H:, 2 * H:].set(c)
    return out


def prepare_params(p, compute_dtype=jnp.bfloat16):
    t = lambda w: jnp.asarray(w).T          # (out, in) -> (in, out)
    # first-stage fused weights, column order [z | r | h]
    w_x1 = jnp.concatenate([t(p["x2zr_w"]), t(p["x2h_w"])], axis=1)        # (Din,3H)
    w_tpx = jnp.concatenate([t(p["tp2zr_x_w"]), t(p["tp2h_x_w"])], axis=1)  # (K,3H)
    w_h1 = jnp.concatenate([t(p["h2zr_w"]), t(p["h2h_w"])], axis=1)        # (H,3H)
    w_tph = jnp.concatenate([t(p["tp2zr_h_w"]), t(p["tp2h_h_w"])], axis=1)  # (K,3H)
    # second-stage block-diagonal weights (z/r/h second stages are independent)
    w_x2 = _block_diag3(t(p["xtp2z_w"]), t(p["xtp2r_w"]), t(p["xtp2h_w"]))  # (3H,3H)
    w_h2 = _block_diag3(t(p["htp2z_w"]), t(p["htp2r_w"]), t(p["htp2h_w"]))  # (3H,3H)
    b_x2 = jnp.concatenate([p["xtp2z_b"], p["xtp2r_b"], p["xtp2h_b"]])      # (3H,)
    return {
        "w_x1": w_x1.astype(compute_dtype),
        "w_tpx": w_tpx.astype(compute_dtype),
        "w_x2": w_x2.astype(compute_dtype),
        "b_x2": b_x2.astype(jnp.float32),
        "w_h1": w_h1.astype(compute_dtype),
        "w_tph": w_tph.astype(compute_dtype),
        "w_h2": w_h2.astype(compute_dtype),
    }


# ----------------------------------------------------------------------------
# Forward: batched input-side precompute (parallel) + Pallas recurrence.
# ----------------------------------------------------------------------------
def tpgru_forward(x, topic, mask, prep, *, time_chunk=8, batch_tile=None):
    T, B, _ = x.shape
    H = prep["w_h1"].shape[0]
    H3 = 3 * H
    cdt = prep["w_h1"].dtype
    f32 = jnp.float32

    if batch_tile is None:
        batch_tile = B
    TB, C = batch_tile, time_chunk
    assert T % C == 0, "time_chunk must divide T"
    assert B % TB == 0 and (TB == B or TB % 8 == 0), "batch tile must be B or a multiple of 8"

    def mxu(a, b):  # bf16 operands, f32 accumulation (MXU native)
        return jnp.dot(a.astype(cdt), b, preferred_element_type=f32)

    # ---- input-side path for ALL timesteps in one batched, parallel pass ----
    tp_x = mxu(topic, prep["w_tpx"])                                   # (B,3H)
    s1 = mxu(x, prep["w_x1"])                                          # (T,B,3H)
    pre_in = mxu(s1 * tp_x[None], prep["w_x2"]) + prep["b_x2"]         # (T,B,3H)
    # time-invariant topic modulation of the recurrent path
    tp_h = mxu(topic, prep["w_tph"])                                   # (B,3H)

    mask3 = mask.reshape(T, B, 1).astype(f32)

    # ---- explicit scoped-VMEM budget (scales with H; capped for v7x) --------
    nbytes = lambda shape, dt: math.prod(shape) * jnp.dtype(dt).itemsize
    per_step = (nbytes((C, TB, H3), f32) + nbytes((C, TB, 1), f32)
                + nbytes((C, TB, H), f32))
    resident = (nbytes((TB, H3), f32) + nbytes((H, H3), cdt)
                + nbytes((H3, H3), cdt) + 2 * nbytes((TB, H), f32))
    needed = 2 * per_step + 2 * resident        # x2 for double buffering
    vmem_limit = int(min(64 * 2**20, max(32 * 2**20, 2 * needed)))

    grid = (B // TB, T // C)
    in_specs = [
        pl.BlockSpec((C, TB, H3), lambda b, t: (t, b, 0)),   # pre_in
        pl.BlockSpec((C, TB, 1), lambda b, t: (t, b, 0)),    # mask
        pl.BlockSpec((TB, H3), lambda b, t: (b, 0)),         # tp_h (const in t)
        pl.BlockSpec((H, H3), lambda b, t: (0, 0)),          # w_h1 (resident)
        pl.BlockSpec((H3, H3), lambda b, t: (0, 0)),         # w_h2 (resident)
    ]
    out_specs = (
        pl.BlockSpec((C, TB, H), lambda b, t: (t, b, 0)),    # output sequence
        pl.BlockSpec((TB, H), lambda b, t: (b, 0)),          # final state
    )
    out_shape = (
        jax.ShapeDtypeStruct((T, B, H), f32),
        jax.ShapeDtypeStruct((B, H), f32),
    )

    fn = pl.pallas_call(
        tpgru_recurrence_kernel,
        out_shape=out_shape,
        grid_spec=pltpu.PrefetchScalarGridSpec(
            num_scalar_prefetch=0,
            grid=grid,
            in_specs=in_specs,
            out_specs=out_specs,
            scratch_shapes=[pltpu.VMEM((TB, H), jnp.float32)],
        ),
        compiler_params=pltpu.CompilerParams(
            # batch tiles are independent (megacore on v7x); time is sequential
            dimension_semantics=("parallel", "arbitrary"),
            vmem_limit_bytes=vmem_limit,
        ),
    )
    out, state = fn(pre_in, mask3, tp_h, prep["w_h1"], prep["w_h2"])
    return out, state[None]          # PyTorch returns state of shape (1, B, H)


# ----------------------------------------------------------------------------
# Pure-JAX reference mirroring the PyTorch forward (eval mode), using the same
# per-gate (unfused) weights and the same bf16-operand / f32-accumulate matmul
# numerics as the kernel, to validate the fusion / restructuring.
# ----------------------------------------------------------------------------
def tpgru_ref(x, topic, mask, p):
    T, B, _ = x.shape
    H = p["xtp2z_w"].shape[0]
    dot = lambda a, w: jnp.dot(a.astype(jnp.bfloat16), w.T.astype(jnp.bfloat16),
                               preferred_element_type=jnp.float32)

    ZR_x = dot(x, p["x2zr_w"])
    tp_zr_x = dot(topic, p["tp2zr_x_w"])
    tp_zr_h = dot(topic, p["tp2zr_h_w"])
    ZRtp = ZR_x * tp_zr_x[None]
    Z_xtp, R_xtp = ZRtp[..., :H], ZRtp[..., H:]
    ZR_xtp = jnp.concatenate(
        [dot(Z_xtp, p["xtp2z_w"]) + p["xtp2z_b"],
         dot(R_xtp, p["xtp2r_w"]) + p["xtp2r_b"]], -1)
    H_x = dot(x, p["x2h_w"])
    tp_h_x = dot(topic, p["tp2h_x_w"])
    tp_h_h = dot(topic, p["tp2h_h_w"])
    H_xtp = dot(H_x * tp_h_x[None], p["xtp2h_w"]) + p["xtp2h_b"]

    h_ = jnp.zeros((B, H), jnp.float32)
    outs = []
    for i in range(T):
        m = mask[i][:, None]
        zr_htp = dot(h_, p["h2zr_w"]) * tp_zr_h
        z_htp, r_htp = zr_htp[:, :H], zr_htp[:, H:]
        zr_htp2 = jnp.concatenate(
            [dot(z_htp, p["htp2z_w"]), dot(r_htp, p["htp2r_w"])], -1)
        pre_zr = jax.nn.sigmoid(ZR_xtp[i] + zr_htp2)
        z, r = pre_zr[:, :H], pre_zr[:, H:]
        hh = dot(dot(h_, p["h2h_w"]) * tp_h_h, p["htp2h_w"])
        h = jnp.tanh(H_xtp[i] + r * hh)
        h = (1.0 - z) * h + z * h_
        h = m * h + (1.0 - m) * h_
        outs.append(h)
        h_ = h
    return jnp.stack(outs), h_[None]


# ----------------------------------------------------------------------------
# Deterministic parameter init (uniform(-1/sqrt(H), 1/sqrt(H)), like PyTorch)
# ----------------------------------------------------------------------------
def init_params(key, dim_input, dim_hidden, dim_topic):
    H, Din, K = dim_hidden, dim_input, dim_topic
    std = 1.0 / math.sqrt(H)
    shapes = {
        "x2zr_w": (2 * H, Din),
        "tp2zr_x_w": (2 * H, K),
        "xtp2z_w": (H, H), "xtp2z_b": (H,),
        "xtp2r_w": (H, H), "xtp2r_b": (H,),
        "h2zr_w": (2 * H, H),
        "tp2zr_h_w": (2 * H, K),
        "htp2z_w": (H, H),
        "htp2r_w": (H, H),
        "x2h_w": (H, Din),
        "tp2h_x_w": (H, K),
        "xtp2h_w": (H, H), "xtp2h_b": (H,),
        "h2h_w": (H, H),
        "tp2h_h_w": (H, K),
        "htp2h_w": (H, H),
    }
    params = {}
    keys = jax.random.split(key, len(shapes))
    for (name, shp), k in zip(shapes.items(), keys):
        params[name] = jax.random.uniform(
            k, shp, jnp.float32, minval=-std, maxval=std)
    return params


if __name__ == "__main__":
    # Small test sizes; B is a multiple of 8 (sublane-dense).  For production,
    # H / Din / K should be multiples of 128 for lane-dense stores & MXU fill.
    T, B, Din, H, K = 16, 8, 16, 32, 8

    key = jax.random.PRNGKey(0)
    k_p, k_x, k_tp, k_m = jax.random.split(key, 4)

    params = init_params(k_p, Din, H, K)
    x = jax.random.normal(k_x, (T, B, Din), jnp.float32)
    topic = jax.random.normal(k_tp, (B, K), jnp.float32)
    # mask: mostly ones with some zeros to exercise the masking path
    mask = (jax.random.uniform(k_m, (T, B)) > 0.2).astype(jnp.float32)

    prep = prepare_params(params)                       # one-time re-layout
    fwd = jax.jit(functools.partial(tpgru_forward, time_chunk=8))
    out, state = fwd(x, topic, mask, prep)
    out = jax.block_until_ready(out)
    state = jax.block_until_ready(state)

    out_ref, state_ref = tpgru_ref(x, topic, mask, params)
    assert out.shape == (T, B, H) and state.shape == (1, B, H)
    err_o = float(jnp.max(jnp.abs(out - out_ref)))
    err_s = float(jnp.max(jnp.abs(state - state_ref)))
    assert err_o < 2e-3 and err_s < 2e-3, (err_o, err_s)

    print("KERNEL_OK")
</pallas_src>

<mosaic_0001>
module attributes {stable_mosaic.version = 11 : i64} {
  func.func @tpgru_recurrence_kernel(%arg0: i32, %arg1: i32, %arg2: memref<8x8x96xf32, #tpu.memory_space<vmem>>, %arg3: memref<8x8x1xf32, #tpu.memory_space<vmem>>, %arg4: memref<8x96xf32, #tpu.memory_space<vmem>>, %arg5: memref<32x96xbf16, #tpu.memory_space<vmem>>, %arg6: memref<96x96xbf16, #tpu.memory_space<vmem>>, %arg7: memref<8x8x32xf32, #tpu.memory_space<vmem>>, %arg8: memref<8x32xf32, #tpu.memory_space<vmem>>, %arg9: memref<8x32xf32, #tpu.memory_space<vmem>>) attributes {dimension_semantics = [#tpu.dimension_semantics<parallel>, #tpu.dimension_semantics<arbitrary>], iteration_bounds = array<i64: 1, 2>, scalar_prefetch = 0 : i64, scratch_operands = 1 : i64, tpu.core_type = #tpu.core_type<tc>, window_params = [{transform_indices = @transform_0, window_bounds = array<i64: 8, 8, 96>}, {transform_indices = @transform_1, window_bounds = array<i64: 8, 8, 1>}, {transform_indices = @transform_2, window_bounds = array<i64: 8, 96>}, {pipeline_mode = #tpu.pipeline_mode<synchronous>, transform_indices = @transform_3, window_bounds = array<i64: 32, 96>}, {pipeline_mode = #tpu.pipeline_mode<synchronous>, transform_indices = @transform_4, window_bounds = array<i64: 96, 96>}, {transform_indices = @transform_5, window_bounds = array<i64: 8, 8, 32>}, {transform_indices = @transform_6, window_bounds = array<i64: 8, 32>}]} {
    %c0_i32 = arith.constant 0 : i32
    %0 = arith.cmpi eq, %arg1, %c0_i32 : i32
    %1 = arith.extui %0 : i1 to i32
    %c0_i32_0 = arith.constant 0 : i32
    %2 = arith.cmpi ne, %1, %c0_i32_0 : i32
    scf.if %2 {
      %cst_100 = arith.constant 0.000000e+00 : f32
      %347 = vector.broadcast %cst_100 : f32 to vector<8x32xf32>
      %c0_101 = arith.constant 0 : index
      %c0_102 = arith.constant 0 : index
      %348 = vector.load %arg9[%c0_101, %c0_102] : memref<8x32xf32, #tpu.memory_space<vmem>>, vector<8x32xf32>
      tpu.vector_store %arg9[%c0_101, %c0_102], %347 {strides = array<i32>} : memref<8x32xf32, #tpu.memory_space<vmem>>, vector<8x32xf32>,
    } else {
    }
    %c0 = arith.constant 0 : index
    %c0_1 = arith.constant 0 : index
    %3 = vector.load %arg5[%c0, %c0_1] : memref<32x96xbf16, #tpu.memory_space<vmem>>, vector<32x96xbf16>
    %c0_2 = arith.constant 0 : index
    %c0_3 = arith.constant 0 : index
    %4 = vector.load %arg6[%c0_2, %c0_3] : memref<96x96xbf16, #tpu.memory_space<vmem>>, vector<96x96xbf16>
    %c0_4 = arith.constant 0 : index
    %c0_5 = arith.constant 0 : index
    %5 = vector.load %arg4[%c0_4, %c0_5] : memref<8x96xf32, #tpu.memory_space<vmem>>, vector<8x96xf32>
    %c0_6 = arith.constant 0 : index
    %c0_7 = arith.constant 0 : index
    %6 = vector.load %arg9[%c0_6, %c0_7] : memref<8x32xf32, #tpu.memory_space<vmem>>, vector<8x32xf32>
    %c0_i32_8 = arith.constant 0 : i32
    %7 = arith.index_cast %c0_i32_8 : i32 to index
    %c0_9 = arith.constant 0 : index
    %c0_10 = arith.constant 0 : index
    %8 = vector.load %arg2[%7, %c0_9, %c0_10] : memref<8x8x96xf32, #tpu.memory_space<vmem>>, vector<1x8x96xf32>
    %9 = vector.shape_cast %8 : vector<1x8x96xf32> to vector<8x96xf32>
    %10 = arith.index_cast %c0_i32_8 : i32 to index
    %c0_11 = arith.constant 0 : index
    %c0_12 = arith.constant 0 : index
    %11 = vector.load %arg3[%10, %c0_11, %c0_12] : memref<8x8x1xf32, #tpu.memory_space<vmem>>, vector<1x8x1xf32>
    %12 = vector.shape_cast %11 : vector<1x8x1xf32> to vector<8x1xf32>
    %13 = arith.truncf %6 : vector<8x32xf32> to vector<8x32xbf16>
    %cst = arith.constant dense<0.000000e+00> : vector<8x96xf32>
    %14 = tpu.matmul %13, %3, %cst {dimension_numbers = #tpu.dot_dimension_numbers<[1], [0], [0], [1], [0, 0, 1, 1], [], []>} : vector<8x32xbf16>, vector<32x96xbf16>, vector<8x96xf32> -> vector<8x96xf32>
    %15 = arith.mulf %14, %5 : vector<8x96xf32>
    %16 = arith.truncf %15 : vector<8x96xf32> to vector<8x96xbf16>
    %cst_13 = arith.constant dense<0.000000e+00> : vector<8x96xf32>
    %17 = tpu.matmul %16, %4, %cst_13 {dimension_numbers = #tpu.dot_dimension_numbers<[1], [0], [0], [1], [0, 0, 1, 1], [], []>} : vector<8x96xbf16>, vector<96x96xbf16>, vector<8x96xf32> -> vector<8x96xf32>
    %18 = vector.extract_strided_slice %9 {offsets = [0, 0], sizes = [8, 64], strides = [1, 1]} : vector<8x96xf32> to vector<8x64xf32>
    %19 = vector.extract_strided_slice %17 {offsets = [0, 0], sizes = [8, 64], strides = [1, 1]} : vector<8x96xf32> to vector<8x64xf32>
    %20 = arith.addf %18, %19 : vector<8x64xf32>
    %21 = arith.negf %20 : vector<8x64xf32>
    %22 = math.exp %21 : vector<8x64xf32>
    %cst_14 = arith.constant 1.000000e+00 : f32
    %23 = vector.broadcast %cst_14 : f32 to vector<8x64xf32>
    %24 = arith.addf %23, %22 : vector<8x64xf32>
    %25 = arith.divf %23, %24 : vector<8x64xf32>
    %26 = vector.extract_strided_slice %25 {offsets = [0, 0], sizes = [8, 32], strides = [1, 1]} : vector<8x64xf32> to vector<8x32xf32>
    %27 = vector.extract_strided_slice %25 {offsets = [0, 32], sizes = [8, 32], strides = [1, 1]} : vector<8x64xf32> to vector<8x32xf32>
    %28 = vector.extract_strided_slice %9 {offsets = [0, 64], sizes = [8, 32], strides = [1, 1]} : vector<8x96xf32> to vector<8x32xf32>
    %29 = vector.extract_strided_slice %17 {offsets = [0, 64], sizes = [8, 32], strides = [1, 1]} : vector<8x96xf32> to vector<8x32xf32>
    %30 = arith.mulf %27, %29 : vector<8x32xf32>
    %31 = arith.addf %28, %30 : vector<8x32xf32>
    %32 = math.tanh %31 : vector<8x32xf32>
    %cst_15 = arith.constant 1.000000e+00 : f32
    %33 = vector.broadcast %cst_15 : f32 to vector<8x32xf32>
    %34 = arith.subf %33, %26 : vector<8x32xf32>
    %35 = arith.mulf %34, %32 : vector<8x32xf32>
    %36 = arith.mulf %26, %6 : vector<8x32xf32>
    %37 = arith.addf %35, %36 : vector<8x32xf32>
    %38 = vector.broadcast %12 : vector<8x1xf32> to vector<8x32xf32>
    %39 = arith.mulf %38, %37 : vector<8x32xf32>
    %cst_16 = arith.constant 1.000000e+00 : f32
    %40 = vector.broadcast %cst_16 : f32 to vector<8x1xf32>
    %41 = arith.subf %40, %12 : vector<8x1xf32>
    %42 = vector.broadcast %41 : vector<8x1xf32> to vector<8x32xf32>
    %43 = arith.mulf %42, %6 : vector<8x32xf32>
    %44 = arith.addf %39, %43 : vector<8x32xf32>
    %45 = arith.index_cast %c0_i32_8 : i32 to index
    %c0_17 = arith.constant 0 : index
    %c0_18 = arith.constant 0 : index
    %46 = vector.load %arg7[%45, %c0_17, %c0_18] : memref<8x8x32xf32, #tpu.memory_space<vmem>>, vector<1x8x32xf32>
    %47 = vector.shape_cast %46 : vector<1x8x32xf32> to vector<8x32xf32>
    %48 = vector.shape_cast %44 : vector<8x32xf32> to vector<1x8x32xf32>
    tpu.vector_store %arg7[%45, %c0_17, %c0_18], %48 {strides = array<i32>} : memref<8x8x32xf32, #tpu.memory_space<vmem>>, vector<1x8x32xf32>,
    %c1_i32 = arith.constant 1 : i32
    %49 = arith.index_cast %c1_i32 : i32 to index
    %c0_19 = arith.constant 0 : index
    %c0_20 = arith.constant 0 : index
    %50 = vector.load %arg2[%49, %c0_19, %c0_20] : memref<8x8x96xf32, #tpu.memory_space<vmem>>, vector<1x8x96xf32>
    %51 = vector.shape_cast %50 : vector<1x8x96xf32> to vector<8x96xf32>
    %52 = arith.index_cast %c1_i32 : i32 to index
    %c0_21 = arith.constant 0 : index
    %c0_22 = arith.constant 0 : index
    %53 = vector.load %arg3[%52, %c0_21, %c0_22] : memref<8x8x1xf32, #tpu.memory_space<vmem>>, vector<1x8x1xf32>
    %54 = vector.shape_cast %53 : vector<1x8x1xf32> to vector<8x1xf32>
    %55 = arith.truncf %44 : vector<8x32xf32> to vector<8x32xbf16>
    %cst_23 = arith.constant dense<0.000000e+00> : vector<8x96xf32>
    %56 = tpu.matmul %55, %3, %cst_23 {dimension_numbers = #tpu.dot_dimension_numbers<[1], [0], [0], [1], [0, 0, 1, 1], [], []>} : vector<8x32xbf16>, vector<32x96xbf16>, vector<8x96xf32> -> vector<8x96xf32>
    %57 = arith.mulf %56, %5 : vector<8x96xf32>
    %58 = arith.truncf %57 : vector<8x96xf32> to vector<8x96xbf16>
    %cst_24 = arith.constant dense<0.000000e+00> : vector<8x96xf32>
    %59 = tpu.matmul %58, %4, %cst_24 {dimension_numbers = #tpu.dot_dimension_numbers<[1], [0], [0], [1], [0, 0, 1, 1], [], []>} : vector<8x96xbf16>, vector<96x96xbf16>, vector<8x96xf32> -> vector<8x96xf32>
    %60 = vector.extract_strided_slice %51 {offsets = [0, 0], sizes = [8, 64], strides = [1, 1]} : vector<8x96xf32> to vector<8x64xf32>
    %61 = vector.extract_strided_slice %59 {offsets = [0, 0], sizes = [8, 64], strides = [1, 1]} : vector<8x96xf32> to vector<8x64xf32>
    %62 = arith.addf %60, %61 : vector<8x64xf32>
    %63 = arith.negf %62 : vector<8x64xf32>
    %64 = math.exp %63 : vector<8x64xf32>
    %cst_25 = arith.constant 1.000000e+00 : f32
    %65 = vector.broadcast %cst_25 : f32 to vector<8x64xf32>
    %66 = arith.addf %65, %64 : vector<8x64xf32>
    %67 = arith.divf %65, %66 : vector<8x64xf32>
    %68 = vector.extract_strided_slice %67 {offsets = [0, 0], sizes = [8, 32], strides = [1, 1]} : vector<8x64xf32> to vector<8x32xf32>
    %69 = vector.extract_strided_slice %67 {offsets = [0, 32], sizes = [8, 32], strides = [1, 1]} : vector<8x64xf32> to vector<8x32xf32>
    %70 = vector.extract_strided_slice %51 {offsets = [0, 64], sizes = [8, 32], strides = [1, 1]} : vector<8x96xf32> to vector<8x32xf32>
    %71 = vector.extract_strided_slice %59 {offsets = [0, 64], sizes = [8, 32], strides = [1, 1]} : vector<8x96xf32> to vector<8x32xf32>
    %72 = arith.mulf %69, %71 : vector<8x32xf32>
    %73 = arith.addf %70, %72 : vector<8x32xf32>
    %74 = math.tanh %73 : vector<8x32xf32>
    %cst_26 = arith.constant 1.000000e+00 : f32
    %75 = vector.broadcast %cst_26 : f32 to vector<8x32xf32>
    %76 = arith.subf %75, %68 : vector<8x32xf32>
    %77 = arith.mulf %76, %74 : vector<8x32xf32>
    %78 = arith.mulf %68, %44 : vector<8x32xf32>
    %79 = arith.addf %77, %78 : vector<8x32xf32>
    %80 = vector.broadcast %54 : vector<8x1xf32> to vector<8x32xf32>
    %81 = arith.mulf %80, %79 : vector<8x32xf32>
    %cst_27 = arith.constant 1.000000e+00 : f32
    %82 = vector.broadcast %cst_27 : f32 to vector<8x1xf32>
    %83 = arith.subf %82, %54 : vector<8x1xf32>
    %84 = vector.broadcast %83 : vector<8x1xf32> to vector<8x32xf32>
    %85 = arith.mulf %84, %44 : vector<8x32xf32>
    %86 = arith.addf %81, %85 : vector<8x32xf32>
    %87 = arith.index_cast %c1_i32 : i32 to index
    %c0_28 = arith.constant 0 : index
    %c0_29 = arith.constant 0 : index
    %88 = vector.load %arg7[%87, %c0_28, %c0_29] : memref<8x8x32xf32, #tpu.memory_space<vmem>>, vector<1x8x32xf32>
    %89 = vector.shape_cast %88 : vector<1x8x32xf32> to vector<8x32xf32>
    %90 = vector.shape_cast %86 : vector<8x32xf32> to vector<1x8x32xf32>
    tpu.vector_store %arg7[%87, %c0_28, %c0_29], %90 {strides = array<i32>} : memref<8x8x32xf32, #tpu.memory_space<vmem>>, vector<1x8x32xf32>,
    %c2_i32 = arith.constant 2 : i32
    %91 = arith.index_cast %c2_i32 : i32 to index
    %c0_30 = arith.constant 0 : index
    %c0_31 = arith.constant 0 : index
    %92 = vector.load %arg2[%91, %c0_30, %c0_31] : memref<8x8x96xf32, #tpu.memory_space<vmem>>, vector<1x8x96xf32>
    %93 = vector.shape_cast %92 : vector<1x8x96xf32> to vector<8x96xf32>
    %94 = arith.index_cast %c2_i32 : i32 to index
    %c0_32 = arith.constant 0 : index
    %c0_33 = arith.constant 0 : index
    %95 = vector.load %arg3[%94, %c0_32, %c0_33] : memref<8x8x1xf32, #tpu.memory_space<vmem>>, vector<1x8x1xf32>
    %96 = vector.shape_cast %95 : vector<1x8x1xf32> to vector<8x1xf32>
    %97 = arith.truncf %86 : vector<8x32xf32> to vector<8x32xbf16>
    %cst_34 = arith.constant dense<0.000000e+00> : vector<8x96xf32>
    %98 = tpu.matmul %97, %3, %cst_34 {dimension_numbers = #tpu.dot_dimension_numbers<[1], [0], [0], [1], [0, 0, 1, 1], [], []>} : vector<8x32xbf16>, vector<32x96xbf16>, vector<8x96xf32> -> vector<8x96xf32>
    %99 = arith.mulf %98, %5 : vector<8x96xf32>
    %100 = arith.truncf %99 : vector<8x96xf32> to vector<8x96xbf16>
    %cst_35 = arith.constant dense<0.000000e+00> : vector<8x96xf32>
    %101 = tpu.matmul %100, %4, %cst_35 {dimension_numbers = #tpu.dot_dimension_numbers<[1], [0], [0], [1], [0, 0, 1, 1], [], []>} : vector<8x96xbf16>, vector<96x96xbf16>, vector<8x96xf32> -> vector<8x96xf32>
    %102 = vector.extract_strided_slice %93 {offsets = [0, 0], sizes = [8, 64], strides = [1, 1]} : vector<8x96xf32> to vector<8x64xf32>
    %103 = vector.extract_strided_slice %101 {offsets = [0, 0], sizes = [8, 64], strides = [1, 1]} : vector<8x96xf32> to vector<8x64xf32>
    %104 = arith.addf %102, %103 : vector<8x64xf32>
    %105 = arith.negf %104 : vector<8x64xf32>
    %106 = math.exp %105 : vector<8x64xf32>
    %cst_36 = arith.constant 1.000000e+00 : f32
    %107 = vector.broadcast %cst_36 : f32 to vector<8x64xf32>
    %108 = arith.addf %107, %106 : vector<8x64xf32>
    %109 = arith.divf %107, %108 : vector<8x64xf32>
    %110 = vector.extract_strided_slice %109 {offsets = [0, 0], sizes = [8, 32], strides = [1, 1]} : vector<8x64xf32> to vector<8x32xf32>
    %111 = vector.extract_strided_slice %109 {offsets = [0, 32], sizes = [8, 32], strides = [1, 1]} : vector<8x64xf32> to vector<8x32xf32>
    %112 = vector.extract_strided_slice %93 {offsets = [0, 64], sizes = [8, 32], strides = [1, 1]} : vector<8x96xf32> to vector<8x32xf32>
    %113 = vector.extract_strided_slice %101 {offsets = [0, 64], sizes = [8, 32], strides = [1, 1]} : vector<8x96xf32> to vector<8x32xf32>
    %114 = arith.mulf %111, %113 : vector<8x32xf32>
    %115 = arith.addf %112, %114 : vector<8x32xf32>
    %116 = math.tanh %115 : vector<8x32xf32>
    %cst_37 = arith.constant 1.000000e+00 : f32
    %117 = vector.broadcast %cst_37 : f32 to vector<8x32xf32>
    %118 = arith.subf %117, %110 : vector<8x32xf32>
    %119 = arith.mulf %118, %116 : vector<8x32xf32>
    %120 = arith.mulf %110, %86 : vector<8x32xf32>
    %121 = arith.addf %119, %120 : vector<8x32xf32>
    %122 = vector.broadcast %96 : vector<8x1xf32> to vector<8x32xf32>
    %123 = arith.mulf %122, %121 : vector<8x32xf32>
    %cst_38 = arith.constant 1.000000e+00 : f32
    %124 = vector.broadcast %cst_38 : f32 to vector<8x1xf32>
    %125 = arith.subf %124, %96 : vector<8x1xf32>
    %126 = vector.broadcast %125 : vector<8x1xf32> to vector<8x32xf32>
    %127 = arith.mulf %126, %86 : vector<8x32xf32>
    %128 = arith.addf %123, %127 : vector<8x32xf32>
    %129 = arith.index_cast %c2_i32 : i32 to index
    %c0_39 = arith.constant 0 : index
    %c0_40 = arith.constant 0 : index
    %130 = vector.load %arg7[%129, %c0_39, %c0_40] : memref<8x8x32xf32, #tpu.memory_space<vmem>>, vector<1x8x32xf32>
    %131 = vector.shape_cast %130 : vector<1x8x32xf32> to vector<8x32xf32>
    %132 = vector.shape_cast %128 : vector<8x32xf32> to vector<1x8x32xf32>
    tpu.vector_store %arg7[%129, %c0_39, %c0_40], %132 {strides = array<i32>} : memref<8x8x32xf32, #tpu.memory_space<vmem>>, vector<1x8x32xf32>,
    %c3_i32 = arith.constant 3 : i32
    %133 = arith.index_cast %c3_i32 : i32 to index
    %c0_41 = arith.constant 0 : index
    %c0_42 = arith.constant 0 : index
    %134 = vector.load %arg2[%133, %c0_41, %c0_42] : memref<8x8x96xf32, #tpu.memory_space<vmem>>, vector<1x8x96xf32>
    %135 = vector.shape_cast %134 : vector<1x8x96xf32> to vector<8x96xf32>
    %136 = arith.index_cast %c3_i32 : i32 to index
    %c0_43 = arith.constant 0 : index
    %c0_44 = arith.constant 0 : index
    %137 = vector.load %arg3[%136, %c0_43, %c0_44] : memref<8x8x1xf32, #tpu.memory_space<vmem>>, vector<1x8x1xf32>
    %138 = vector.shape_cast %137 : vector<1x8x1xf32> to vector<8x1xf32>
    %139 = arith.truncf %128 : vector<8x32xf32> to vector<8x32xbf16>
    %cst_45 = arith.constant dense<0.000000e+00> : vector<8x96xf32>
    %140 = tpu.matmul %139, %3, %cst_45 {dimension_numbers = #tpu.dot_dimension_numbers<[1], [0], [0], [1], [0, 0, 1, 1], [], []>} : vector<8x32xbf16>, vector<32x96xbf16>, vector<8x96xf32> -> vector<8x96xf32>
    %141 = arith.mulf %140, %5 : vector<8x96xf32>
    %142 = arith.truncf %141 : vector<8x96xf32> to vector<8x96xbf16>
    %cst_46 = arith.constant dense<0.000000e+00> : vector<8x96xf32>
    %143 = tpu.matmul %142, %4, %cst_46 {dimension_numbers = #tpu.dot_dimension_numbers<[1], [0], [0], [1], [0, 0, 1, 1], [], []>} : vector<8x96xbf16>, vector<96x96xbf16>, vector<8x96xf32> -> vector<8x96xf32>
    %144 = vector.extract_strided_slice %135 {offsets = [0, 0], sizes = [8, 64], strides = [1, 1]} : vector<8x96xf32> to vector<8x64xf32>
    %145 = vector.extract_strided_slice %143 {offsets = [0, 0], sizes = [8, 64], strides = [1, 1]} : vector<8x96xf32> to vector<8x64xf32>
    %146 = arith.addf %144, %145 : vector<8x64xf32>
    %147 = arith.negf %146 : vector<8x64xf32>
    %148 = math.exp %147 : vector<8x64xf32>
    %cst_47 = arith.constant 1.000000e+00 : f32
    %149 = vector.broadcast %cst_47 : f32 to vector<8x64xf32>
    %150 = arith.addf %149, %148 : vector<8x64xf32>
    %151 = arith.divf %149, %150 : vector<8x64xf32>
    %152 = vector.extract_strided_slice %151 {offsets = [0, 0], sizes = [8, 32], strides = [1, 1]} : vector<8x64xf32> to vector<8x32xf32>
    %153 = vector.extract_strided_slice %151 {offsets = [0, 32], sizes = [8, 32], strides = [1, 1]} : vector<8x64xf32> to vector<8x32xf32>
    %154 = vector.extract_strided_slice %135 {offsets = [0, 64], sizes = [8, 32], strides = [1, 1]} : vector<8x96xf32> to vector<8x32xf32>
    %155 = vector.extract_strided_slice %143 {offsets = [0, 64], sizes = [8, 32], strides = [1, 1]} : vector<8x96xf32> to vector<8x32xf32>
    %156 = arith.mulf %153, %155 : vector<8x32xf32>
    %157 = arith.addf %154, %156 : vector<8x32xf32>
    %158 = math.tanh %157 : vector<8x32xf32>
    %cst_48 = arith.constant 1.000000e+00 : f32
    %159 = vector.broadcast %cst_48 : f32 to vector<8x32xf32>
    %160 = arith.subf %159, %152 : vector<8x32xf32>
    %161 = arith.mulf %160, %158 : vector<8x32xf32>
    %162 = arith.mulf %152, %128 : vector<8x32xf32>
    %163 = arith.addf %161, %162 : vector<8x32xf32>
    %164 = vector.broadcast %138 : vector<8x1xf32> to vector<8x32xf32>
    %165 = arith.mulf %164, %163 : vector<8x32xf32>
    %cst_49 = arith.constant 1.000000e+00 : f32
    %166 = vector.broadcast %cst_49 : f32 to vector<8x1xf32>
    %167 = arith.subf %166, %138 : vector<8x1xf32>
    %168 = vector.broadcast %167 : vector<8x1xf32> to vector<8x32xf32>
    %169 = arith.mulf %168, %128 : vector<8x32xf32>
    %170 = arith.addf %165, %169 : vector<8x32xf32>
    %171 = arith.index_cast %c3_i32 : i32 to index
    %c0_50 = arith.constant 0 : index
    %c0_51 = arith.constant 0 : index
    %172 = vector.load %arg7[%171, %c0_50, %c0_51] : memref<8x8x32xf32, #tpu.memory_space<vmem>>, vector<1x8x32xf32>
    %173 = vector.shape_cast %172 : vector<1x8x32xf32> to vector<8x32xf32>
    %174 = vector.shape_cast %170 : vector<8x32xf32> to vector<1x8x32xf32>
    tpu.vector_store %arg7[%171, %c0_50, %c0_51], %174 {strides = array<i32>} : memref<8x8x32xf32, #tpu.memory_space<vmem>>, vector<1x8x32xf32>,
    %c4_i32 = arith.constant 4 : i32
    %175 = arith.index_cast %c4_i32 : i32 to index
    %c0_52 = arith.constant 0 : index
    %c0_53 = arith.constant 0 : index
    %176 = vector.load %arg2[%175, %c0_52, %c0_53] : memref<8x8x96xf32, #tpu.memory_space<vmem>>, vector<1x8x96xf32>
    %177 = vector.shape_cast %176 : vector<1x8x96xf32> to vector<8x96xf32>
    %178 = arith.index_cast %c4_i32 : i32 to index
    %c0_54 = arith.constant 0 : index
    %c0_55 = arith.constant 0 : index
    %179 = vector.load %arg3[%178, %c0_54, %c0_55] : memref<8x8x1xf32, #tpu.memory_space<vmem>>, vector<1x8x1xf32>
    %180 = vector.shape_cast %179 : vector<1x8x1xf32> to vector<8x1xf32>
    %181 = arith.truncf %170 : vector<8x32xf32> to vector<8x32xbf16>
    %cst_56 = arith.constant dense<0.000000e+00> : vector<8x96xf32>
    %182 = tpu.matmul %181, %3, %cst_56 {dimension_numbers = #tpu.dot_dimension_numbers<[1], [0], [0], [1], [0, 0, 1, 1], [], []>} : vector<8x32xbf16>, vector<32x96xbf16>, vector<8x96xf32> -> vector<8x96xf32>
    %183 = arith.mulf %182, %5 : vector<8x96xf32>
    %184 = arith.truncf %183 : vector<8x96xf32> to vector<8x96xbf16>
    %cst_57 = arith.constant dense<0.000000e+00> : vector<8x96xf32>
    %185 = tpu.matmul %184, %4, %cst_57 {dimension_numbers = #tpu.dot_dimension_numbers<[1], [0], [0], [1], [0, 0, 1, 1], [], []>} : vector<8x96xbf16>, vector<96x96xbf16>, vector<8x96xf32> -> vector<8x96xf32>
    %186 = vector.extract_strided_slice %177 {offsets = [0, 0], sizes = [8, 64], strides = [1, 1]} : vector<8x96xf32> to vector<8x64xf32>
    %187 = vector.extract_strided_slice %185 {offsets = [0, 0], sizes = [8, 64], strides = [1, 1]} : vector<8x96xf32> to vector<8x64xf32>
    %188 = arith.addf %186, %187 : vector<8x64xf32>
    %189 = arith.negf %188 : vector<8x64xf32>
    %190 = math.exp %189 : vector<8x64xf32>
    %cst_58 = arith.constant 1.000000e+00 : f32
    %191 = vector.broadcast %cst_58 : f32 to vector<8x64xf32>
    %192 = arith.addf %191, %190 : vector<8x64xf32>
    %193 = arith.divf %191, %192 : vector<8x64xf32>
    %194 = vector.extract_strided_slice %193 {offsets = [0, 0], sizes = [8, 32], strides = [1, 1]} : vector<8x64xf32> to vector<8x32xf32>
    %195 = vector.extract_strided_slice %193 {offsets = [0, 32], sizes = [8, 32], strides = [1, 1]} : vector<8x64xf32> to vector<8x32xf32>
    %196 = vector.extract_strided_slice %177 {offsets = [0, 64], sizes = [8, 32], strides = [1, 1]} : vector<8x96xf32> to vector<8x32xf32>
    %197 = vector.extract_strided_slice %185 {offsets = [0, 64], sizes = [8, 32], strides = [1, 1]} : vector<8x96xf32> to vector<8x32xf32>
    %198 = arith.mulf %195, %197 : vector<8x32xf32>
    %199 = arith.addf %196, %198 : vector<8x32xf32>
    %200 = math.tanh %199 : vector<8x32xf32>
    %cst_59 = arith.constant 1.000000e+00 : f32
    %201 = vector.broadcast %cst_59 : f32 to vector<8x32xf32>
    %202 = arith.subf %201, %194 : vector<8x32xf32>
    %203 = arith.mulf %202, %200 : vector<8x32xf32>
    %204 = arith.mulf %194, %170 : vector<8x32xf32>
    %205 = arith.addf %203, %204 : vector<8x32xf32>
    %206 = vector.broadcast %180 : vector<8x1xf32> to vector<8x32xf32>
    %207 = arith.mulf %206, %205 : vector<8x32xf32>
    %cst_60 = arith.constant 1.000000e+00 : f32
    %208 = vector.broadcast %cst_60 : f32 to vector<8x1xf32>
    %209 = arith.subf %208, %180 : vector<8x1xf32>
    %210 = vector.broadcast %209 : vector<8x1xf32> to vector<8x32xf32>
    %211 = arith.mulf %210, %170 : vector<8x32xf32>
    %212 = arith.addf %207, %211 : vector<8x32xf32>
    %213 = arith.index_cast %c4_i32 : i32 to index
    %c0_61 = arith.constant 0 : index
    %c0_62 = arith.constant 0 : index
    %214 = vector.load %arg7[%213, %c0_61, %c0_62] : memref<8x8x32xf32, #tpu.memory_space<vmem>>, vector<1x8x32xf32>
    %215 = vector.shape_cast %214 : vector<1x8x32xf32> to vector<8x32xf32>
    %216 = vector.shape_cast %212 : vector<8x32xf32> to vector<1x8x32xf32>
    tpu.vector_store %arg7[%213, %c0_61, %c0_62], %216 {strides = array<i32>} : memref<8x8x32xf32, #tpu.memory_space<vmem>>, vector<1x8x32xf32>,
    %c5_i32 = arith.constant 5 : i32
    %217 = arith.index_cast %c5_i32 : i32 to index
    %c0_63 = arith.constant 0 : index
    %c0_64 = arith.constant 0 : index
    %218 = vector.load %arg2[%217, %c0_63, %c0_64] : memref<8x8x96xf32, #tpu.memory_space<vmem>>, vector<1x8x96xf32>
    %219 = vector.shape_cast %218 : vector<1x8x96xf32> to vector<8x96xf32>
    %220 = arith.index_cast %c5_i32 : i32 to index
    %c0_65 = arith.constant 0 : index
    %c0_66 = arith.constant 0 : index
    %221 = vector.load %arg3[%220, %c0_65, %c0_66] : memref<8x8x1xf32, #tpu.memory_space<vmem>>, vector<1x8x1xf32>
    %222 = vector.shape_cast %221 : vector<1x8x1xf32> to vector<8x1xf32>
    %223 = arith.truncf %212 : vector<8x32xf32> to vector<8x32xbf16>
    %cst_67 = arith.constant dense<0.000000e+00> : vector<8x96xf32>
    %224 = tpu.matmul %223, %3, %cst_67 {dimension_numbers = #tpu.dot_dimension_numbers<[1], [0], [0], [1], [0, 0, 1, 1], [], []>} : vector<8x32xbf16>, vector<32x96xbf16>, vector<8x96xf32> -> vector<8x96xf32>
    %225 = arith.mulf %224, %5 : vector<8x96xf32>
    %226 = arith.truncf %225 : vector<8x96xf32> to vector<8x96xbf16>
    %cst_68 = arith.constant dense<0.000000e+00> : vector<8x96xf32>
    %227 = tpu.matmul %226, %4, %cst_68 {dimension_numbers = #tpu.dot_dimension_numbers<[1], [0], [0], [1], [0, 0, 1, 1], [], []>} : vector<8x96xbf16>, vector<96x96xbf16>, vector<8x96xf32> -> vector<8x96xf32>
    %228 = vector.extract_strided_slice %219 {offsets = [0, 0], sizes = [8, 64], strides = [1, 1]} : vector<8x96xf32> to vector<8x64xf32>
    %229 = vector.extract_strided_slice %227 {offsets = [0, 0], sizes = [8, 64], strides = [1, 1]} : vector<8x96xf32> to vector<8x64xf32>
    %230 = arith.addf %228, %229 : vector<8x64xf32>
    %231 = arith.negf %230 : vector<8x64xf32>
    %232 = math.exp %231 : vector<8x64xf32>
    %cst_69 = arith.constant 1.000000e+00 : f32
    %233 = vector.broadcast %cst_69 : f32 to vector<8x64xf32>
    %234 = arith.addf %233, %232 : vector<8x64xf32>
    %235 = arith.divf %233, %234 : vector<8x64xf32>
    %236 = vector.extract_strided_slice %235 {offsets = [0, 0], sizes = [8, 32], strides = [1, 1]} : vector<8x64xf32> to vector<8x32xf32>
    %237 = vector.extract_strided_slice %235 {offsets = [0, 32], sizes = [8, 32], strides = [1, 1]} : vector<8x64xf32> to vector<8x32xf32>
    %238 = vector.extract_strided_slice %219 {offsets = [0, 64], sizes = [8, 32], strides = [1, 1]} : vector<8x96xf32> to vector<8x32xf32>
    %239 = vector.extract_strided_slice %227 {offsets = [0, 64], sizes = [8, 32], strides = [1, 1]} : vector<8x96xf32> to vector<8x32xf32>
    %240 = arith.mulf %237, %239 : vector<8x32xf32>
    %241 = arith.addf %238, %240 : vector<8x32xf32>
    %242 = math.tanh %241 : vector<8x32xf32>
    %cst_70 = arith.constant 1.000000e+00 : f32
    %243 = vector.broadcast %cst_70 : f32 to vector<8x32xf32>
    %244 = arith.subf %243, %236 : vector<8x32xf32>
    %245 = arith.mulf %244, %242 : vector<8x32xf32>
    %246 = arith.mulf %236, %212 : vector<8x32xf32>
    %247 = arith.addf %245, %246 : vector<8x32xf32>
    %248 = vector.broadcast %222 : vector<8x1xf32> to vector<8x32xf32>
    %249 = arith.mulf %248, %247 : vector<8x32xf32>
    %cst_71 = arith.constant 1.000000e+00 : f32
    %250 = vector.broadcast %cst_71 : f32 to vector<8x1xf32>
    %251 = arith.subf %250, %222 : vector<8x1xf32>
    %252 = vector.broadcast %251 : vector<8x1xf32> to vector<8x32xf32>
    %253 = arith.mulf %252, %212 : vector<8x32xf32>
    %254 = arith.addf %249, %253 : vector<8x32xf32>
    %255 = arith.index_cast %c5_i32 : i32 to index
    %c0_72 = arith.constant 0 : index
    %c0_73 = arith.constant 0 : index
    %256 = vector.load %arg7[%255, %c0_72, %c0_73] : memref<8x8x32xf32, #tpu.memory_space<vmem>>, vector<1x8x32xf32>
    %257 = vector.shape_cast %256 : vector<1x8x32xf32> to vector<8x32xf32>
    %258 = vector.shape_cast %254 : vector<8x32xf32> to vector<1x8x32xf32>
    tpu.vector_store %arg7[%255, %c0_72, %c0_73], %258 {strides = array<i32>} : memref<8x8x32xf32, #tpu.memory_space<vmem>>, vector<1x8x32xf32>,
    %c6_i32 = arith.constant 6 : i32
    %259 = arith.index_cast %c6_i32 : i32 to index
    %c0_74 = arith.constant 0 : index
    %c0_75 = arith.constant 0 : index
    %260 = vector.load %arg2[%259, %c0_74, %c0_75] : memref<8x8x96xf32, #tpu.memory_space<vmem>>, vector<1x8x96xf32>
    %261 = vector.shape_cast %260 : vector<1x8x96xf32> to vector<8x96xf32>
    %262 = arith.index_cast %c6_i32 : i32 to index
    %c0_76 = arith.constant 0 : index
    %c0_77 = arith.constant 0 : index
    %263 = vector.load %arg3[%262, %c0_76, %c0_77] : memref<8x8x1xf32, #tpu.memory_space<vmem>>, vector<1x8x1xf32>
    %264 = vector.shape_cast %263 : vector<1x8x1xf32> to vector<8x1xf32>
    %265 = arith.truncf %254 : vector<8x32xf32> to vector<8x32xbf16>
    %cst_78 = arith.constant dense<0.000000e+00> : vector<8x96xf32>
    %266 = tpu.matmul %265, %3, %cst_78 {dimension_numbers = #tpu.dot_dimension_numbers<[1], [0], [0], [1], [0, 0, 1, 1], [], []>} : vector<8x32xbf16>, vector<32x96xbf16>, vector<8x96xf32> -> vector<8x96xf32>
    %267 = arith.mulf %266, %5 : vector<8x96xf32>
    %268 = arith.truncf %267 : vector<8x96xf32> to vector<8x96xbf16>
    %cst_79 = arith.constant dense<0.000000e+00> : vector<8x96xf32>
    %269 = tpu.matmul %268, %4, %cst_79 {dimension_numbers = #tpu.dot_dimension_numbers<[1], [0], [0], [1], [0, 0, 1, 1], [], []>} : vector<8x96xbf16>, vector<96x96xbf16>, vector<8x96xf32> -> vector<8x96xf32>
    %270 = vector.extract_strided_slice %261 {offsets = [0, 0], sizes = [8, 64], strides = [1, 1]} : vector<8x96xf32> to vector<8x64xf32>
    %271 = vector.extract_strided_slice %269 {offsets = [0, 0], sizes = [8, 64], strides = [1, 1]} : vector<8x96xf32> to vector<8x64xf32>
    %272 = arith.addf %270, %271 : vector<8x64xf32>
    %273 = arith.negf %272 : vector<8x64xf32>
    %274 = math.exp %273 : vector<8x64xf32>
    %cst_80 = arith.constant 1.000000e+00 : f32
    %275 = vector.broadcast %cst_80 : f32 to vector<8x64xf32>
    %276 = arith.addf %275, %274 : vector<8x64xf32>
    %277 = arith.divf %275, %276 : vector<8x64xf32>
    %278 = vector.extract_strided_slice %277 {offsets = [0, 0], sizes = [8, 32], strides = [1, 1]} : vector<8x64xf32> to vector<8x32xf32>
    %279 = vector.extract_strided_slice %277 {offsets = [0, 32], sizes = [8, 32], strides = [1, 1]} : vector<8x64xf32> to vector<8x32xf32>
    %280 = vector.extract_strided_slice %261 {offsets = [0, 64], sizes = [8, 32], strides = [1, 1]} : vector<8x96xf32> to vector<8x32xf32>
    %281 = vector.extract_strided_slice %269 {offsets = [0, 64], sizes = [8, 32], strides = [1, 1]} : vector<8x96xf32> to vector<8x32xf32>
    %282 = arith.mulf %279, %281 : vector<8x32xf32>
    %283 = arith.addf %280, %282 : vector<8x32xf32>
    %284 = math.tanh %283 : vector<8x32xf32>
    %cst_81 = arith.constant 1.000000e+00 : f32
    %285 = vector.broadcast %cst_81 : f32 to vector<8x32xf32>
    %286 = arith.subf %285, %278 : vector<8x32xf32>
    %287 = arith.mulf %286, %284 : vector<8x32xf32>
    %288 = arith.mulf %278, %254 : vector<8x32xf32>
    %289 = arith.addf %287, %288 : vector<8x32xf32>
    %290 = vector.broadcast %264 : vector<8x1xf32> to vector<8x32xf32>
    %291 = arith.mulf %290, %289 : vector<8x32xf32>
    %cst_82 = arith.constant 1.000000e+00 : f32
    %292 = vector.broadcast %cst_82 : f32 to vector<8x1xf32>
    %293 = arith.subf %292, %264 : vector<8x1xf32>
    %294 = vector.broadcast %293 : vector<8x1xf32> to vector<8x32xf32>
    %295 = arith.mulf %294, %254 : vector<8x32xf32>
    %296 = arith.addf %291, %295 : vector<8x32xf32>
    %297 = arith.index_cast %c6_i32 : i32 to index
    %c0_83 = arith.constant 0 : index
    %c0_84 = arith.constant 0 : index
    %298 = vector.load %arg7[%297, %c0_83, %c0_84] : memref<8x8x32xf32, #tpu.memory_space<vmem>>, vector<1x8x32xf32>
    %299 = vector.shape_cast %298 : vector<1x8x32xf32> to vector<8x32xf32>
    %300 = vector.shape_cast %296 : vector<8x32xf32> to vector<1x8x32xf32>
    tpu.vector_store %arg7[%297, %c0_83, %c0_84], %300 {strides = array<i32>} : memref<8x8x32xf32, #tpu.memory_space<vmem>>, vector<1x8x32xf32>,
    %c7_i32 = arith.constant 7 : i32
    %301 = arith.index_cast %c7_i32 : i32 to index
    %c0_85 = arith.constant 0 : index
    %c0_86 = arith.constant 0 : index
    %302 = vector.load %arg2[%301, %c0_85, %c0_86] : memref<8x8x96xf32, #tpu.memory_space<vmem>>, vector<1x8x96xf32>
    %303 = vector.shape_cast %302 : vector<1x8x96xf32> to vector<8x96xf32>
    %304 = arith.index_cast %c7_i32 : i32 to index
    %c0_87 = arith.constant 0 : index
    %c0_88 = arith.constant 0 : index
    %305 = vector.load %arg3[%304, %c0_87, %c0_88] : memref<8x8x1xf32, #tpu.memory_space<vmem>>, vector<1x8x1xf32>
    %306 = vector.shape_cast %305 : vector<1x8x1xf32> to vector<8x1xf32>
    %307 = arith.truncf %296 : vector<8x32xf32> to vector<8x32xbf16>
    %cst_89 = arith.constant dense<0.000000e+00> : vector<8x96xf32>
    %308 = tpu.matmul %307, %3, %cst_89 {dimension_numbers = #tpu.dot_dimension_numbers<[1], [0], [0], [1], [0, 0, 1, 1], [], []>} : vector<8x32xbf16>, vector<32x96xbf16>, vector<8x96xf32> -> vector<8x96xf32>
    %309 = arith.mulf %308, %5 : vector<8x96xf32>
    %310 = arith.truncf %309 : vector<8x96xf32> to vector<8x96xbf16>
    %cst_90 = arith.constant dense<0.000000e+00> : vector<8x96xf32>
    %311 = tpu.matmul %310, %4, %cst_90 {dimension_numbers = #tpu.dot_dimension_numbers<[1], [0], [0], [1], [0, 0, 1, 1], [], []>} : vector<8x96xbf16>, vector<96x96xbf16>, vector<8x96xf32> -> vector<8x96xf32>
    %312 = vector.extract_strided_slice %303 {offsets = [0, 0], sizes = [8, 64], strides = [1, 1]} : vector<8x96xf32> to vector<8x64xf32>
    %313 = vector.extract_strided_slice %311 {offsets = [0, 0], sizes = [8, 64], strides = [1, 1]} : vector<8x96xf32> to vector<8x64xf32>
    %314 = arith.addf %312, %313 : vector<8x64xf32>
    %315 = arith.negf %314 : vector<8x64xf32>
    %316 = math.exp %315 : vector<8x64xf32>
    %cst_91 = arith.constant 1.000000e+00 : f32
    %317 = vector.broadcast %cst_91 : f32 to vector<8x64xf32>
    %318 = arith.addf %317, %316 : vector<8x64xf32>
    %319 = arith.divf %317, %318 : vector<8x64xf32>
    %320 = vector.extract_strided_slice %319 {offsets = [0, 0], sizes = [8, 32], strides = [1, 1]} : vector<8x64xf32> to vector<8x32xf32>
    %321 = vector.extract_strided_slice %319 {offsets = [0, 32], sizes = [8, 32], strides = [1, 1]} : vector<8x64xf32> to vector<8x32xf32>
    %322 = vector.extract_strided_slice %303 {offsets = [0, 64], sizes = [8, 32], strides = [1, 1]} : vector<8x96xf32> to vector<8x32xf32>
    %323 = vector.extract_strided_slice %311 {offsets = [0, 64], sizes = [8, 32], strides = [1, 1]} : vector<8x96xf32> to vector<8x32xf32>
    %324 = arith.mulf %321, %323 : vector<8x32xf32>
    %325 = arith.addf %322, %324 : vector<8x32xf32>
    %326 = math.tanh %325 : vector<8x32xf32>
    %cst_92 = arith.constant 1.000000e+00 : f32
    %327 = vector.broadcast %cst_92 : f32 to vector<8x32xf32>
    %328 = arith.subf %327, %320 : vector<8x32xf32>
    %329 = arith.mulf %328, %326 : vector<8x32xf32>
    %330 = arith.mulf %320, %296 : vector<8x32xf32>
    %331 = arith.addf %329, %330 : vector<8x32xf32>
    %332 = vector.broadcast %306 : vector<8x1xf32> to vector<8x32xf32>
    %333 = arith.mulf %332, %331 : vector<8x32xf32>
    %cst_93 = arith.constant 1.000000e+00 : f32
    %334 = vector.broadcast %cst_93 : f32 to vector<8x1xf32>
    %335 = arith.subf %334, %306 : vector<8x1xf32>
    %336 = vector.broadcast %335 : vector<8x1xf32> to vector<8x32xf32>
    %337 = arith.mulf %336, %296 : vector<8x32xf32>
    %338 = arith.addf %333, %337 : vector<8x32xf32>
    %339 = arith.index_cast %c7_i32 : i32 to index
    %c0_94 = arith.constant 0 : index
    %c0_95 = arith.constant 0 : index
    %340 = vector.load %arg7[%339, %c0_94, %c0_95] : memref<8x8x32xf32, #tpu.memory_space<vmem>>, vector<1x8x32xf32>
    %341 = vector.shape_cast %340 : vector<1x8x32xf32> to vector<8x32xf32>
    %342 = vector.shape_cast %338 : vector<8x32xf32> to vector<1x8x32xf32>
    tpu.vector_store %arg7[%339, %c0_94, %c0_95], %342 {strides = array<i32>} : memref<8x8x32xf32, #tpu.memory_space<vmem>>, vector<1x8x32xf32>,
    %c8_i32 = arith.constant 8 : i32
    %c0_96 = arith.constant 0 : index
    %c0_97 = arith.constant 0 : index
    %343 = vector.load %arg9[%c0_96, %c0_97] : memref<8x32xf32, #tpu.memory_space<vmem>>, vector<8x32xf32>
    tpu.vector_store %arg9[%c0_96, %c0_97], %338 {strides = array<i32>} : memref<8x32xf32, #tpu.memory_space<vmem>>, vector<8x32xf32>,
    %c1_i32_98 = arith.constant 1 : i32
    %344 = arith.cmpi eq, %arg1, %c1_i32_98 : i32
    %345 = arith.extui %344 : i1 to i32
    %c0_i32_99 = arith.constant 0 : i32
    %346 = arith.cmpi ne, %345, %c0_i32_99 : i32
    scf.if %346 {
      %c0_100 = arith.constant 0 : index
      %c0_101 = arith.constant 0 : index
      %347 = vector.load %arg8[%c0_100, %c0_101] : memref<8x32xf32, #tpu.memory_space<vmem>>, vector<8x32xf32>
      tpu.vector_store %arg8[%c0_100, %c0_101], %338 {strides = array<i32>} : memref<8x32xf32, #tpu.memory_space<vmem>>, vector<8x32xf32>,
    } else {
    }
    return
  }
  func.func @transform_0(%arg0: i32, %arg1: i32) -> (i32, i32, i32) {
    %c0_i32 = arith.constant 0 : i32
    %c0_i32_0 = arith.constant 0 : i32
    return %arg1, %arg0, %c0_i32 : i32, i32, i32
  }
  func.func @transform_1(%arg0: i32, %arg1: i32) -> (i32, i32, i32) {
    %c0_i32 = arith.constant 0 : i32
    %c0_i32_0 = arith.constant 0 : i32
    return %arg1, %arg0, %c0_i32 : i32, i32, i32
  }
  func.func @transform_2(%arg0: i32, %arg1: i32) -> (i32, i32) {
    %c0_i32 = arith.constant 0 : i32
    %c0_i32_0 = arith.constant 0 : i32
    return %arg0, %c0_i32 : i32, i32
  }
  func.func @transform_3(%arg0: i32, %arg1: i32) -> (i32, i32) {
    %c0_i32 = arith.constant 0 : i32
    %c0_i32_0 = arith.constant 0 : i32
    %c0_i32_1 = arith.constant 0 : i32
    return %c0_i32, %c0_i32_0 : i32, i32
  }
  func.func @transform_4(%arg0: i32, %arg1: i32) -> (i32, i32) {
    %c0_i32 = arith.constant 0 : i32
    %c0_i32_0 = arith.constant 0 : i32
    %c0_i32_1 = arith.constant 0 : i32
    return %c0_i32, %c0_i32_0 : i32, i32
  }
  func.func @transform_5(%arg0: i32, %arg1: i32) -> (i32, i32, i32) {
    %c0_i32 = arith.constant 0 : i32
    %c0_i32_0 = arith.constant 0 : i32
    return %arg1, %arg0, %c0_i32 : i32, i32, i32
  }
  func.func @transform_6(%arg0: i32, %arg1: i32) -> (i32, i32) {
    %c0_i32 = arith.constant 0 : i32
    %c0_i32_0 = arith.constant 0 : i32
    return %arg0, %c0_i32 : i32, i32
  }
}

</mosaic_0001>

<bundles_post_ra>
// kernel: tpgru_forward.1
= control target key start
LH: loop header
LB: loop body
LE: loop exit
PB: predicated region body
PF: predicated region fallthrough
CT: control target
= control target key end

     0   :  { %s2024_s0 = inlined_call_operand.vmem [shape: f32[16,8,96], index: 0, kind: input, shape index: {}]   ;;  %s2025_s1 = inlined_call_operand.vmem [shape: f32[16,8,1], index: 1, kind: input, shape index: {}]   ;;  %s2026_s2 = inlined_call_operand.vmem [shape: f32[8,96], index: 2, kind: input, shape index: {}]   ;;  %s2027_s3 = inlined_call_operand.vmem [shape: bf16[32,96], index: 3, kind: input, shape index: {}]   ;;  %s2028_s4 = inlined_call_operand.vmem [shape: bf16[96,96], index: 4, kind: input, shape index: {}]   ;;  %s2029_s5 = inlined_call_operand.hbm [shape: f32[16,8,32], index: 5, kind: output, shape index: {0}]   ;;  %s2030_s6 = inlined_call_operand.hbm [shape: f32[8,32], index: 6, kind: output, shape index: {1}]  }
   0x1   :  { %2031 = sst [smem:[#allocation9_spill]] %s2024_s0 }
   0x2   :  { %12 = vsyncpa [#allocation4], 0 }
   0x3   :  { %14 = vsyncpa [#allocation4 + $0x1], 0 }
   0x4   :  { %15 = vsyncpa [#allocation6], 0  ;;  %s1693_s21 = smov 0   ;;  %s1695_s22 = smov 0  }
   0x5   :  { %s1697_s23 = smov 0   ;;  %s1699_s24 = smov 0  }
   0x6   :  { %s1701_s25 = smov 0   ;;  %s1703_s26 = smov 0  }
   0x7 LB: > { %s1312_s27 = sadd.s32 4294967295, %s1648_s26   ;;  %s1313_s28 = sadd.s32 4294967294, %s1648_s26   ;;  %s1648_s26 = sphi %s1703_s26, %s21_s26   ;;  %s1644_s25 = sphi %s1701_s25, %s2040_s25   ;;  %s1640_s24 = sphi %s1699_s24, %s2039_s24   ;;  %s1636_s23 = sphi %s1697_s23, %s2038_s23   ;;  %s1632_s22 = sphi %s1695_s22, %s2037_s22   ;;  %s1628_s21 = sphi %s1693_s21, %s2036_s21  }
   0x8   : > { %s30_s29 = sadd.s32 1, %s1644_s25  ;;  %s166_s30 = sadd.s32 1, %s1636_s23 }
   0x9   : > { %p31_p0 = scmp.ge.s32.totalorder %s30_s29, 2  ;;  %p176_p1 = scmp.ne.s32.totalorder %s1636_s23, %s1632_s22 }
   0xa   : > { %p1729_p2 = scmp.eq.s32.totalorder %s1312_s27, 1  ;;  %p182_p3 = scmp.ne.s32.totalorder %s1632_s22, %s1628_s21 }
   0xb   : > { %s2042_s29 = smov (%p31_p0, %s30_s29), 0  ;;  %p183_p5 = scmp.eq.s32.totalorder %s1313_s28, 1 }
   0xc   : > { %p1739_p4 = por %p1729_p2, %p176_p1  ;;  %s161_s9 = ssub.s32 %s1644_s25, %s2042_s29 }
   0xd   : > { %p1317_p6 = scmp.ge.s32.totalorder %s1648_s26, 1  ;;  %p164_p7 = scmp.eq.s32.totalorder %s161_s9, 0 }
   0xe   : > { %p1746_p8 = por %p183_p5, %p182_p3  ;;  %p264_p9 = scmp.lt.s32.totalorder %s1648_s26, 3 }
   0xf   : > { %s1752_s11 = scalar_select %p164_p7, %s1636_s23, %s166_s30  }
  0x10   : > { %p265_p10 = pnand %p1317_p6, %p264_p9 }
  0x11   : > { %s304_s12 = sand.u32 (!%p265_p10), 1, %s1632_s22   ;;  %s1319_s13 = sshll.u32 (!%p265_p10), %s1640_s24, 3 }
  0x12   : > { %268 = sbr.rel (%p265_p10) target bundleno = 4922 (0x133a), region = 40  ;;  %s1318_s14 = sshll.u32 (!%p265_p10), %s304_s12, 6 }
  0x13   : > { %p310_p11 = scmp.lt.s32.totalorder (!%p265_p10), %s1319_s13, 15  ;;  %s2035_s0 = sld [smem:[#allocation9_spill]] (!%p265_p10) }
  0x14   : > { %s1768_s28 = scalar_lea.vmem (!%p265_p10), [#allocation3], %s1318_s14  ;;  %p1323_p12 = scmp.ne.s32.totalorder (!%p265_p10), %s1640_s24, 0 }
  0x17   : > { %s2044_s13 = smov (!%p310_p11, %s1319_s13), 15  ;;  %336 = sbr.rel (%p1323_p12) target bundleno = 30 (0x1e), region = 44 }
  0x18   : > { %s1320_s15 = sshll.u32 %s2044_s13, 3 }
  0x19   : > { %s1761_s18 = scalar_lea.vmem %s2035_s0, %s1320_s15  ;;  %s1766_s27 = scalar_lea.vmem %s2025_s1, %s1320_s15 }
  0x1c   : > { %vm337_vm0 = vcmask 261120   ;;  %v1650_v0 = vmov 0.0  }
  0x1d   : > { %338 = vst.msk [vmem:[#allocation2] sm:$0xff] %vm337_vm0, %v1650_v0 }
  0x1e PF: > { %v1774_v1 = vld [vmem:[%s2027_s3 + $0x8] sm:$0xff]  ;;  %v1785_v3 = vld [vmem:[%s2027_s3] sm:$0xff]  ;;  %vm372_vm1 = vcmask 261120   ;;  %v1805_v7 = vld [vmem:[%s2028_s4 + $0x18] sm:$0xff]  ;;  %vm427_vm2 = vcmask 785408   ;;  %s1651_s30 = smov 96  }
  0x1f   : > { %v1779_v2 = vld [vmem:[%s2028_s4 + $0x28] sm:$0xff]  ;;  %382 = vmatpush.bf16.msra.mxu0 %v1774_v1  ;;  %512 = vmatpush.bf16.msra.mxu2 %v1774_v1  ;;  %v1794_v5 = vld [vmem:[%s2028_s4 + $0x20] sm:$0xff]  ;;  %v1815_v8 = vld [vmem:[%s2028_s4 + $0x10] sm:$0xff]  ;;  %s1652_s9 = smov 32   ;;  %v1653_v35 = vmov 0   ;;  %s1654_s13 = smov 64  }
  0x20   : > { %433 = vmatpush.bf16.msra.mxu1 %v1779_v2  ;;  %526 = vmatpush.bf16.msra.mxu3 %v1779_v2  ;;  %v1825_v9 = vld [vmem:[%s2028_s4 + $0x8] sm:$0xff]  ;;  %v1837_v10 = vld [vmem:[%s2028_s4] sm:$0xff]  ;;  %p1401_p13 = scmp.ne.s32.totalorder %s1640_s24, 1 }
  0x21   : > { %v1853_v11 = vld [vmem:[%s2026_s2] sm:$0xff]  ;;  %1487 = vset.pattern.permute.xlu1 %v1653_v35  ;;  %1488 = vset.pattern.permute.xlu2 %v1653_v35  ;;  %v1360_v57 = vld [vmem:[%s1766_s27 + $0x8] sm:$0xff] }
  0x22   : > { %v357_v18 = vld [vmem:[%s1761_s18] sm:$0xff]  ;;  %1489 = vset.pattern.permute.xlu0 %v1653_v35  ;;  %v1359_v59 = vld [vmem:[%s1761_s18 + $0x8] sm:$0xff] }
  0x23   : > { %383 = vmatpush.bf16.msra.mxu0 %v1785_v3  ;;  %513 = vmatpush.bf16.msra.mxu2 %v1785_v3  ;;  %v358_v36 = vld [vmem:[%s1766_s27] sm:$0xff] }
  0x24   : > { %v1787_v4 = vld [vmem:[#allocation2] sm:$0xff]  ;;  %434 = vmatpush.bf16.msra.mxu1 %v1794_v5  ;;  %527 = vmatpush.bf16.msra.mxu3 %v1794_v5  ;;  %v489_v37 = vsub.f32 1.0, %v358_v36 }
  0x25   : > { %v359_v6 = vpack.c.bf16 %v1787_v4, %v1787_v4 }
  0x26   : > { %492 = vperm.xlu2 %1488, %v489_v37  }
  0x27   : > { %606 = vmatpush.bf16.msrb.mxu0 %v1774_v1  ;;  %620 = vmatpush.bf16.msrb.mxu2 %v1779_v2 }
  0x28   : > { %1332 = vmatmul.msk.bf16.vlgmr.msra.gmra.mxu0 %vm372_vm1, %v359_v6  ;;  %435 = vmatpush.bf16.msra.mxu1 %v1805_v7 }
  0x29   : > { %528 = vmatpush.bf16.msra.mxu3 %v1805_v7 }
  0x2b   : > { %607 = vmatpush.bf16.msrb.mxu0 %v1785_v3  ;;  %621 = vmatpush.bf16.msrb.mxu2 %v1794_v5 }
  0x2c   : > { %436 = vmatpush.bf16.msra.mxu1 %v1815_v8 }
  0x2d   : > { %529 = vmatpush.bf16.msra.mxu3 %v1815_v8 }
  0x2f   : > { %700 = vmatpush.bf16.msra.mxu0 %v1774_v1  ;;  %622 = vmatpush.bf16.msrb.mxu2 %v1805_v7 }
  0x30   : > { %437 = vmatpush.bf16.msra.mxu1 %v1825_v9 }
  0x31   : > { %530 = vmatpush.bf16.msra.mxu3 %v1825_v9 }
  0x33   : > { %701 = vmatpush.bf16.msra.mxu0 %v1785_v3  ;;  %623 = vmatpush.bf16.msrb.mxu2 %v1815_v8 }
  0x34   : > { %438 = vmatpush.bf16.msra.mxu1 %v1837_v10 }
  0x35   : > { %531 = vmatpush.bf16.msra.mxu3 %v1837_v10 }
  0x37   : > { %624 = vmatpush.bf16.msrb.mxu2 %v1825_v9 }
  0x38   : > { %714 = vmatpush.bf16.msrb.mxu1 %v1779_v2 }
  0x39   : > { %794 = vmatpush.bf16.msrb.mxu3 %v1774_v1 }
  0x3b   : > { %625 = vmatpush.bf16.msrb.mxu2 %v1837_v10 }
  0x3c   : > { %715 = vmatpush.bf16.msrb.mxu1 %v1794_v5 }
  0x3d   : > { %795 = vmatpush.bf16.msrb.mxu3 %v1785_v3 }
  0x40   : > { %716 = vmatpush.bf16.msrb.mxu1 %v1805_v7 }
  0x44   : > { %717 = vmatpush.bf16.msrb.mxu1 %v1815_v8 }
  0x48   : > { %718 = vmatpush.bf16.msrb.mxu1 %v1825_v9 }
  0x4c   : > { %719 = vmatpush.bf16.msrb.mxu1 %v1837_v10 }
  0x80   : > { %v493_v44 = vpop.permute.xlu2 %492 }
  0x81   : > { %v495_v46 = vmul.f32 %v493_v44, %v1787_v4  ;;  %v1365_v44 = vld [vmem:[%s1761_s18 + $0x10] sm:$0xff] }
  0xa5   : > { %v385_v12 = vpop.f32.mrf.mxu0 }
  0xa6   : > { %v389_v13 = vmul.f32 %v385_v12, %v1853_v11 }
  0xa8   : > { %v390_v14 = vpack.c.bf16 %v389_v13, %v389_v13 }
  0xaa   : > { %1357 = vmatmul.msk.bf16.vlgmr.msra.gmra.mxu1 %vm427_vm2, %v390_v14 }
  0xab   : > { %1090 = vmatpush.bf16.msra.mxu1 %v1779_v2 }
  0xad   : > { %v387_v15 = vpop.f32.mrf.mxu0 }
  0xaf   : > { %1091 = vmatpush.bf16.msra.mxu1 %v1794_v5 }
  0xb3   : > { %1092 = vmatpush.bf16.msra.mxu1 %v1805_v7 }
  0xb7   : > { %1093 = vmatpush.bf16.msra.mxu1 %v1815_v8 }
  0xbb   : > { %1094 = vmatpush.bf16.msra.mxu1 %v1825_v9 }
  0xbf   : > { %1095 = vmatpush.bf16.msra.mxu1 %v1837_v10 }
 0x127   : > { %v440_v16 = vpop.f32.mrf.mxu1 }
 0x128   : > { %465 = vrot.lane.b32.xlu0 %v440_v16, %s1651_s30  ;;  %v444_v19 = vadd.f32 %v440_v16, %v357_v18 }
 0x12a   : > { %v1358_v20 = vmul.f32 -1.442695, %v444_v19 }
 0x12c   : > { %1490 = vpow2.f32 %v1358_v20 }
 0x12f   : > { %v442_v17 = vpop.f32.mrf.mxu1 }
 0x132   : > { %v1491_v21 = vpop.eup %1490 }
 0x133   : > { %v448_v22 = vadd.f32 1.0, %v1491_v21  ;;  %v582_v21 = vsub.f32 1.0, %v1360_v57 }
 0x135   : > { %1492 = vrcp.f32 %v448_v22  ;;  %v460_v28 = vand.u32 2147483648, %v448_v22  ;;  %vm454_vm4 = vweird.f32 %v448_v22  ;;  %v458_v29 = vand.u32 2147483647, %v448_v22 }
 0x137   : > { %v461_v31 = vor.u32 1.1754944e-38, %v460_v28  ;;  %vm459_vm6 = vcmp.eq.f32.partialorder %v458_v29, 8.507059e+37 }
 0x13b   : > { %v1493_v23 = vpop.eup %1492 }
 0x13c   : > { %v450_v24 = vmul.f32 %v1493_v23, %v448_v22  ;;  %vm455_vm3 = vweird.f32 %v1493_v23  ;;  %v1366_v22 = vld [vmem:[%s1766_s27 + $0x10] sm:$0xff] }
 0x13d   : > { %vm456_vm5 = vmor %vm454_vm4, %vm455_vm3 }
 0x13e   : > { %v451_v25 = vsub.f32 1.0, %v450_v24 }
 0x140   : > { %v452_v26 = vmul.f32 %v1493_v23, %v451_v25 }
 0x142   : > { %v453_v27 = vadd.f32 %v1493_v23, %v452_v26 }
 0x144   : > { %v457_v30 = vsel %vm456_vm5, %v1493_v23, %v453_v27  ;;  %v676_v23 = vsub.f32 1.0, %v1366_v22 }
 0x145   : > { %v462_v33 = vsel %vm459_vm6, %v461_v31, %v457_v30 }
 0x146   : > { %v475_v42 = vsub.f32 1.0, %v462_v33  ;;  %v481_v45 = vmul.f32 %v462_v33, %v1787_v4 }
 0x19a   : > { %v466_v32 = vpop.permute.xlu0 %465 }
 0x19b   : > { %v468_v34 = vmul.f32 %v466_v32, %v462_v33 }
 0x19d   : > { %470 = vrot.lane.b32.xlu0 %v468_v34, %s1652_s9 }
 0x20f   : > { %v471_v38 = vpop.permute.xlu0 %470 }
 0x210   : > { %v473_v39 = vadd.f32 %v471_v38, %v357_v18 }
 0x212   : > { %1494 = vtanh.f32 %v473_v39 }
 0x218   : > { %v1495_v40 = vpop.eup %1494 }
 0x219   : > { %477 = vrot.lane.b32.xlu1 %v1495_v40, %s1654_s13 }
 0x221   : > { %485 = vperm.xlu1 %1487, %v358_v36  }
 0x28b   : > { %v478_v41 = vpop.permute.xlu1 %477 }
 0x28c   : > { %v480_v43 = vmul.f32 %v478_v41, %v475_v42 }
 0x28e   : > { %v482_v47 = vadd.f32 %v481_v45, %v480_v43 }
 0x293   : > { %v486_v48 = vpop.permute.xlu1 %485 }
 0x294   : > { %v488_v49 = vmul.f32 %v486_v48, %v482_v47 }
 0x296   : > { %v1870_v50 = vadd.f32 %v495_v46, %v488_v49 }
 0x298   : > { %497 = vst.msk [vmem:[%s1768_s28] sm:$0xff] %vm372_vm1, %v1870_v50  ;;  %v502_v51 = vpack.c.bf16 %v1870_v50, %v1870_v50 }
 0x29a   : > { %1361 = vmatmul.msk.bf16.vlgmr.msra.gmra.mxu2 %vm372_vm1, %v502_v51 }
 0x29b   : > { %808 = vmatpush.bf16.msra.mxu2 %v1779_v2 }
 0x29f   : > { %809 = vmatpush.bf16.msra.mxu2 %v1794_v5 }
 0x2a3   : > { %810 = vmatpush.bf16.msra.mxu2 %v1805_v7 }
 0x2a7   : > { %811 = vmatpush.bf16.msra.mxu2 %v1815_v8 }
 0x2ab   : > { %812 = vmatpush.bf16.msra.mxu2 %v1825_v9 }
 0x2af   : > { %813 = vmatpush.bf16.msra.mxu2 %v1837_v10 }
 0x31d   : > { %v515_v52 = vpop.f32.mrf.mxu2 }
 0x31e   : > { %v519_v53 = vmul.f32 %v515_v52, %v1853_v11 }
 0x320   : > { %v520_v54 = vpack.c.bf16 %v519_v53, %v519_v53 }
 0x322   : > { %1362 = vmatmul.msk.bf16.vlgmr.msra.gmra.mxu3 %vm427_vm2, %v520_v54 }
 0x323   : > { %902 = vmatpush.bf16.msra.mxu3 %v1779_v2 }
 0x325   : > { %v517_v55 = vpop.f32.mrf.mxu2 }
 0x327   : > { %903 = vmatpush.bf16.msra.mxu3 %v1794_v5 }
 0x32b   : > { %904 = vmatpush.bf16.msra.mxu3 %v1805_v7 }
 0x32f   : > { %905 = vmatpush.bf16.msra.mxu3 %v1815_v8 }
 0x333   : > { %906 = vmatpush.bf16.msra.mxu3 %v1825_v9 }
 0x337   : > { %907 = vmatpush.bf16.msra.mxu3 %v1837_v10 }
 0x3a5   : > { %v533_v56 = vpop.f32.mrf.mxu3 }
 0x3a6   : > { %558 = vrot.lane.b32.xlu2 %v533_v56, %s1651_s30  ;;  %v537_v60 = vadd.f32 %v1359_v59, %v533_v56 }
 0x3a8   : > { %v1363_v61 = vmul.f32 -1.442695, %v537_v60 }
 0x3aa   : > { %1496 = vpow2.f32 %v1363_v61 }
 0x3ad   : > { %v535_v58 = vpop.f32.mrf.mxu3 }
 0x3ae   : > { %578 = vperm.xlu2 %1488, %v1360_v57  }
 0x3b0   : > { %v1497_v62 = vpop.eup %1496 }
 0x3b1   : > { %v541_v63 = vadd.f32 1.0, %v1497_v62 }
 0x3b3   : > { %1498 = vrcp.f32 %v541_v63  ;;  %v553_v14 = vand.u32 2147483648, %v541_v63  ;;  %vm547_vm8 = vweird.f32 %v541_v63  ;;  %v551_v15 = vand.u32 2147483647, %v541_v63 }
 0x3b5   : > { %v554_v17 = vor.u32 1.1754944e-38, %v553_v14  ;;  %vm552_vm10 = vcmp.eq.f32.partialorder %v551_v15, 8.507059e+37 }
 0x3b9   : > { %v1499_v0 = vpop.eup %1498 }
 0x3ba   : > { %v543_v4 = vmul.f32 %v1499_v0, %v541_v63  ;;  %vm548_vm7 = vweird.f32 %v1499_v0 }
 0x3bb   : > { %vm549_vm9 = vmor %vm547_vm8, %vm548_vm7 }
 0x3bc   : > { %v544_v6 = vsub.f32 1.0, %v543_v4 }
 0x3be   : > { %v545_v12 = vmul.f32 %v1499_v0, %v544_v6 }
 0x3c0   : > { %v546_v13 = vadd.f32 %v1499_v0, %v545_v12 }
 0x3c2   : > { %v550_v16 = vsel %vm549_vm9, %v1499_v0, %v546_v13 }
 0x3c3   : > { %v555_v19 = vsel %vm552_vm10, %v554_v17, %v550_v16 }
 0x3c4   : > { %v568_v27 = vsub.f32 1.0, %v555_v19  ;;  %v574_v29 = vmul.f32 %v555_v19, %v1870_v50 }
 0x400   : > { %v559_v18 = vpop.permute.xlu2 %558 }
 0x401   : > { %v561_v20 = vmul.f32 %v559_v18, %v555_v19 }
 0x403   : > { %563 = vrot.lane.b32.xlu0 %v561_v20, %s1652_s9 }
 0x408   : > { %v579_v33 = vpop.permute.xlu2 %578 }
 0x40b   : > { %585 = vperm.xlu0 %1489, %v582_v21  }
 0x413   : > { %679 = vperm.xlu0 %1489, %v676_v23  }
 0x475   : > { %v564_v24 = vpop.permute.xlu0 %563 }
 0x476   : > { %v566_v25 = vadd.f32 %v1359_v59, %v564_v24 }
 0x478   : > { %1500 = vtanh.f32 %v566_v25 }
 0x47d   : > { %v586_v31 = vpop.permute.xlu0 %585 }
 0x47e   : > { %v1501_v26 = vpop.eup %1500  ;;  %v588_v34 = vmul.f32 %v586_v31, %v1870_v50 }
 0x47f   : > { %570 = vrot.lane.b32.xlu1 %v1501_v26, %s1654_s13 }
 0x485   : > { %v680_v14 = vpop.permute.xlu0 %679 }
 0x4f1   : > { %v571_v28 = vpop.permute.xlu1 %570 }
 0x4f2   : > { %v573_v30 = vmul.f32 %v571_v28, %v568_v27 }
 0x4f4   : > { %v575_v32 = vadd.f32 %v574_v29, %v573_v30 }
 0x4f6   : > { %v581_v35 = vmul.f32 %v579_v33, %v575_v32 }
 0x4f8   : > { %v589_v36 = vadd.f32 %v588_v34, %v581_v35 }
 0x4fa   : > { %1364 = vst.msk [vmem:[%s1768_s28 + $0x8] sm:$0xff] %vm372_vm1, %v589_v36  ;;  %v596_v37 = vpack.c.bf16 %v589_v36, %v589_v36  ;;  %v682_v16 = vmul.f32 %v680_v14, %v589_v36 }
 0x4fc   : > { %1367 = vmatmul.msk.bf16.vlgmr.msrb.gmra.mxu0 %vm372_vm1, %v596_v37 }
 0x4fd   : > { %888 = vmatpush.bf16.msrb.mxu0 %v1774_v1 }
 0x501   : > { %889 = vmatpush.bf16.msrb.mxu0 %v1785_v3 }
 0x579   : > { %v609_v38 = vpop.f32.mrf.mxu0 }
 0x57a   : > { %v613_v39 = vmul.f32 %v609_v38, %v1853_v11 }
 0x57c   : > { %v614_v40 = vpack.c.bf16 %v613_v39, %v613_v39 }
 0x57e   : > { %1368 = vmatmul.msk.bf16.vlgmr.msrb.gmra.mxu2 %vm427_vm2, %v614_v40 }
 0x57f   : > { %1076 = vmatpush.bf16.msrb.mxu2 %v1774_v1 }
 0x581   : > { %v611_v41 = vpop.f32.mrf.mxu0 }
 0x583   : > { %1077 = vmatpush.bf16.msrb.mxu2 %v1785_v3 }
 0x601   : > { %v627_v42 = vpop.f32.mrf.mxu2 }
 0x602   : > { %652 = vrot.lane.b32.xlu1 %v627_v42, %s1651_s30  ;;  %v631_v45 = vadd.f32 %v1365_v44, %v627_v42 }
 0x604   : > { %v1369_v46 = vmul.f32 -1.442695, %v631_v45 }
 0x606   : > { %1502 = vpow2.f32 %v1369_v46 }
 0x609   : > { %v629_v43 = vpop.f32.mrf.mxu2 }
 0x60c   : > { %v1503_v47 = vpop.eup %1502 }
 0x60d   : > { %v635_v48 = vadd.f32 1.0, %v1503_v47 }
 0x60f   : > { %1504 = vrcp.f32 %v635_v48  ;;  %v647_v54 = vand.u32 2147483648, %v635_v48  ;;  %vm641_vm12 = vweird.f32 %v635_v48  ;;  %v645_v55 = vand.u32 2147483647, %v635_v48 }
 0x611   : > { %v648_v57 = vor.u32 1.1754944e-38, %v647_v54  ;;  %vm646_vm14 = vcmp.eq.f32.partialorder %v645_v55, 8.507059e+37 }
 0x615   : > { %v1505_v49 = vpop.eup %1504 }
 0x616   : > { %v637_v50 = vmul.f32 %v1505_v49, %v635_v48  ;;  %vm642_vm11 = vweird.f32 %v1505_v49 }
 0x617   : > { %vm643_vm13 = vmor %vm641_vm12, %vm642_vm11 }
 0x618   : > { %v638_v51 = vsub.f32 1.0, %v637_v50 }
 0x61a   : > { %v639_v52 = vmul.f32 %v1505_v49, %v638_v51 }
 0x61c   : > { %v640_v53 = vadd.f32 %v1505_v49, %v639_v52 }
 0x61e   : > { %v644_v56 = vsel %vm643_vm13, %v1505_v49, %v640_v53 }
 0x61f   : > { %v649_v59 = vsel %vm646_vm14, %v648_v57, %v644_v56 }
 0x620   : > { %v662_v0 = vsub.f32 1.0, %v649_v59  ;;  %v668_v6 = vmul.f32 %v649_v59, %v589_v36 }
 0x674   : > { %v653_v58 = vpop.permute.xlu1 %652 }
 0x675   : > { %v655_v60 = vmul.f32 %v653_v58, %v649_v59  ;;  %v1378_v58 = vld [vmem:[%s1766_s27 + $0x20] sm:$0xff] }
 0x677   : > { %657 = vrot.lane.b32.xlu2 %v655_v60, %s1652_s9  ;;  %v1377_v60 = vld [vmem:[%s1761_s18 + $0x20] sm:$0xff] }
 0x67f   : > { %672 = vperm.xlu2 %1488, %v1366_v22  }
 0x6d1   : > { %v658_v61 = vpop.permute.xlu2 %657 }
 0x6d2   : > { %v660_v62 = vadd.f32 %v1365_v44, %v658_v61 }
 0x6d4   : > { %1506 = vtanh.f32 %v660_v62 }
 0x6d9   : > { %v673_v15 = vpop.permute.xlu2 %672 }
 0x6da   : > { %v1507_v63 = vpop.eup %1506 }
 0x6db   : > { %664 = vrot.lane.b32.xlu1 %v1507_v63, %s1654_s13 }
 0x74d   : > { %v665_v4 = vpop.permute.xlu1 %664 }
 0x74e   : > { %v667_v12 = vmul.f32 %v665_v4, %v662_v0 }
 0x750   : > { %v669_v13 = vadd.f32 %v668_v6, %v667_v12 }
 0x752   : > { %v675_v17 = vmul.f32 %v673_v15, %v669_v13 }
 0x754   : > { %v683_v18 = vadd.f32 %v682_v16, %v675_v17 }
 0x756   : > { %1370 = vst.msk [vmem:[%s1768_s28 + $0x10] sm:$0xff] %vm372_vm1, %v683_v18  ;;  %v690_v19 = vpack.c.bf16 %v683_v18, %v683_v18 }
 0x758   : > { %1373 = vmatmul.msk.bf16.vlgmr.msra.gmra.mxu0 %vm372_vm1, %v690_v19 }
 0x759   : > { %996 = vmatpush.bf16.msra.mxu0 %v1779_v2  ;;  %v1372_v2 = vld [vmem:[%s1766_s27 + $0x18] sm:$0xff] }
 0x75a   : > { %v770_v38 = vsub.f32 1.0, %v1372_v2 }
 0x75d   : > { %997 = vmatpush.bf16.msra.mxu0 %v1794_v5 }
 0x761   : > { %998 = vmatpush.bf16.msra.mxu0 %v1805_v7  ;;  %v1371_v7 = vld [vmem:[%s1761_s18 + $0x18] sm:$0xff] }
 0x765   : > { %999 = vmatpush.bf16.msra.mxu0 %v1815_v8 }
 0x769   : > { %1000 = vmatpush.bf16.msra.mxu0 %v1825_v9 }
 0x76d   : > { %1001 = vmatpush.bf16.msra.mxu0 %v1837_v10 }
 0x7d5   : > { %v703_v20 = vpop.f32.mrf.mxu0 }
 0x7d6   : > { %v707_v21 = vmul.f32 %v703_v20, %v1853_v11  ;;  %v864_v20 = vsub.f32 1.0, %v1378_v58 }
 0x7d8   : > { %v708_v22 = vpack.c.bf16 %v707_v21, %v707_v21 }
 0x7da   : > { %1374 = vmatmul.msk.bf16.vlgmr.msrb.gmra.mxu1 %vm427_vm2, %v708_v22 }
 0x7dd   : > { %v705_v23 = vpop.f32.mrf.mxu0 }
 0x857   : > { %v721_v24 = vpop.f32.mrf.mxu1 }
 0x858   : > { %746 = vrot.lane.b32.xlu1 %v721_v24, %s1651_s30  ;;  %v725_v25 = vadd.f32 %v1371_v7, %v721_v24 }
 0x85a   : > { %v1375_v8 = vmul.f32 -1.442695, %v725_v25 }
 0x85c   : > { %1508 = vpow2.f32 %v1375_v8 }
 0x85f   : > { %v723_v5 = vpop.f32.mrf.mxu1 }
 0x860   : > { %766 = vperm.xlu1 %1487, %v1372_v2  }
 0x862   : > { %v1509_v9 = vpop.eup %1508 }
 0x863   : > { %v729_v26 = vadd.f32 1.0, %v1509_v9 }
 0x865   : > { %1510 = vrcp.f32 %v729_v26  ;;  %v741_v31 = vand.u32 2147483648, %v729_v26  ;;  %vm735_vm0 = vweird.f32 %v729_v26  ;;  %v739_v32 = vand.u32 2147483647, %v729_v26 }
 0x867   : > { %v742_v34 = vor.u32 1.1754944e-38, %v741_v31  ;;  %vm740_vm4 = vcmp.eq.f32.partialorder %v739_v32, 8.507059e+37 }
 0x86b   : > { %v1511_v10 = vpop.eup %1510 }
 0x86c   : > { %v731_v27 = vmul.f32 %v1511_v10, %v729_v26  ;;  %vm736_vm15 = vweird.f32 %v1511_v10 }
 0x86d   : > { %vm737_vm3 = vmor %vm735_vm0, %vm736_vm15 }
 0x86e   : > { %v732_v28 = vsub.f32 1.0, %v731_v27 }
 0x870   : > { %v733_v29 = vmul.f32 %v1511_v10, %v732_v28 }
 0x872   : > { %v734_v30 = vadd.f32 %v1511_v10, %v733_v29 }
 0x874   : > { %v738_v33 = vsel %vm737_vm3, %v1511_v10, %v734_v30 }
 0x875   : > { %v743_v36 = vsel %vm740_vm4, %v742_v34, %v738_v33  ;;  %v1384_v34 = vld [vmem:[%s1766_s27 + $0x28] sm:$0xff] }
 0x876   : > { %v756_v42 = vsub.f32 1.0, %v743_v36  ;;  %v762_v44 = vmul.f32 %v743_v36, %v683_v18 }
 0x8ca   : > { %v747_v35 = vpop.permute.xlu1 %746 }
 0x8cb   : > { %v749_v37 = vmul.f32 %v747_v35, %v743_v36  ;;  %v1383_v36 = vld [vmem:[%s1761_s18 + $0x28] sm:$0xff] }
 0x8cd   : > { %751 = vrot.lane.b32.xlu2 %v749_v37, %s1652_s9 }
 0x8d2   : > { %v767_v48 = vpop.permute.xlu1 %766 }
 0x8d5   : > { %773 = vperm.xlu2 %1488, %v770_v38  }
 0x927   : > { %v752_v39 = vpop.permute.xlu2 %751 }
 0x928   : > { %v754_v40 = vadd.f32 %v1371_v7, %v752_v39 }
 0x92a   : > { %1512 = vtanh.f32 %v754_v40 }
 0x92f   : > { %v774_v46 = vpop.permute.xlu2 %773 }
 0x930   : > { %v1513_v41 = vpop.eup %1512  ;;  %v776_v49 = vmul.f32 %v774_v46, %v683_v18 }
 0x931   : > { %758 = vrot.lane.b32.xlu0 %v1513_v41, %s1654_s13 }
 0x9a3   : > { %v759_v43 = vpop.permute.xlu0 %758 }
 0x9a4   : > { %v761_v45 = vmul.f32 %v759_v43, %v756_v42 }
 0x9a6   : > { %v763_v47 = vadd.f32 %v762_v44, %v761_v45 }
 0x9a8   : > { %v769_v50 = vmul.f32 %v767_v48, %v763_v47 }
 0x9aa   : > { %v777_v51 = vadd.f32 %v776_v49, %v769_v50 }
 0x9ac   : > { %1376 = vst.msk [vmem:[%s1768_s28 + $0x18] sm:$0xff] %vm372_vm1, %v777_v51  ;;  %v784_v52 = vpack.c.bf16 %v777_v51, %v777_v51 }
 0x9ae   : > { %1379 = vmatmul.msk.bf16.vlgmr.msrb.gmra.mxu3 %vm372_vm1, %v784_v52 }
 0x9af   : > { %982 = vmatpush.bf16.msrb.mxu3 %v1774_v1 }
 0x9b3   : > { %983 = vmatpush.bf16.msrb.mxu3 %v1785_v3 }
 0xa31   : > { %v797_v53 = vpop.f32.mrf.mxu3 }
 0xa32   : > { %v801_v54 = vmul.f32 %v797_v53, %v1853_v11  ;;  %v958_v53 = vsub.f32 1.0, %v1384_v34 }
 0xa34   : > { %v802_v55 = vpack.c.bf16 %v801_v54, %v801_v54 }
 0xa36   : > { %1380 = vmatmul.msk.bf16.vlgmr.msra.gmra.mxu2 %vm427_vm2, %v802_v55 }
 0xa39   : > { %v799_v56 = vpop.f32.mrf.mxu3 }
 0xab9   : > { %v815_v57 = vpop.f32.mrf.mxu2 }
 0xaba   : > { %840 = vrot.lane.b32.xlu0 %v815_v57, %s1651_s30  ;;  %v819_v61 = vadd.f32 %v1377_v60, %v815_v57 }
 0xabc   : > { %v1381_v62 = vmul.f32 -1.442695, %v819_v61 }
 0xabe   : > { %1514 = vpow2.f32 %v1381_v62 }
 0xac1   : > { %v817_v59 = vpop.f32.mrf.mxu2 }
 0xac2   : > { %860 = vperm.xlu0 %1489, %v1378_v58  }
 0xac4   : > { %v1515_v1 = vpop.eup %1514 }
 0xac5   : > { %v823_v63 = vadd.f32 1.0, %v1515_v1 }
 0xac7   : > { %1516 = vrcp.f32 %v823_v63  ;;  %v835_v13 = vand.u32 2147483648, %v823_v63  ;;  %vm829_vm6 = vweird.f32 %v823_v63  ;;  %v833_v14 = vand.u32 2147483647, %v823_v63 }
 0xac9   : > { %v836_v16 = vor.u32 1.1754944e-38, %v835_v13  ;;  %vm834_vm8 = vcmp.eq.f32.partialorder %v833_v14, 8.507059e+37 }
 0xacd   : > { %v1517_v3 = vpop.eup %1516 }
 0xace   : > { %v825_v0 = vmul.f32 %v1517_v3, %v823_v63  ;;  %vm830_vm5 = vweird.f32 %v1517_v3 }
 0xacf   : > { %vm831_vm7 = vmor %vm829_vm6, %vm830_vm5 }
 0xad0   : > { %v826_v4 = vsub.f32 1.0, %v825_v0 }
 0xad2   : > { %v827_v6 = vmul.f32 %v1517_v3, %v826_v4 }
 0xad4   : > { %v828_v12 = vadd.f32 %v1517_v3, %v827_v6 }
 0xad6   : > { %v832_v15 = vsel %vm831_vm7, %v1517_v3, %v828_v12 }
 0xad7   : > { %v837_v18 = vsel %vm834_vm8, %v836_v16, %v832_v15  ;;  %v1390_v16 = vld [vmem:[%s1766_s27 + $0x30] sm:$0xff] }
 0xad8   : > { %v850_v24 = vsub.f32 1.0, %v837_v18  ;;  %v856_v5 = vmul.f32 %v837_v18, %v777_v51 }
 0xb2c   : > { %v841_v17 = vpop.permute.xlu0 %840 }
 0xb2d   : > { %v843_v19 = vmul.f32 %v841_v17, %v837_v18  ;;  %v1389_v18 = vld [vmem:[%s1761_s18 + $0x30] sm:$0xff] }
 0xb2f   : > { %845 = vrot.lane.b32.xlu1 %v843_v19, %s1652_s9 }
 0xb34   : > { %v861_v9 = vpop.permute.xlu0 %860 }
 0xb37   : > { %867 = vperm.xlu1 %1487, %v864_v20  }
 0xba1   : > { %v846_v21 = vpop.permute.xlu1 %845 }
 0xba2   : > { %v848_v22 = vadd.f32 %v1377_v60, %v846_v21 }
 0xba4   : > { %1518 = vtanh.f32 %v848_v22 }
 0xba9   : > { %v868_v25 = vpop.permute.xlu1 %867 }
 0xbaa   : > { %v1519_v23 = vpop.eup %1518  ;;  %v870_v26 = vmul.f32 %v868_v25, %v777_v51 }
 0xbab   : > { %852 = vrot.lane.b32.xlu2 %v1519_v23, %s1654_s13 }
 0xc05   : > { %v853_v2 = vpop.permute.xlu2 %852 }
 0xc06   : > { %v855_v7 = vmul.f32 %v853_v2, %v850_v24 }
 0xc08   : > { %v857_v8 = vadd.f32 %v856_v5, %v855_v7 }
 0xc0a   : > { %v863_v10 = vmul.f32 %v861_v9, %v857_v8 }
 0xc0c   : > { %v871_v27 = vadd.f32 %v870_v26, %v863_v10 }
 0xc0e   : > { %1382 = vst.msk [vmem:[%s1768_s28 + $0x20] sm:$0xff] %vm372_vm1, %v871_v27  ;;  %v878_v28 = vpack.c.bf16 %v871_v27, %v871_v27 }
 0xc10   : > { %1385 = vmatmul.msk.bf16.vlgmr.msrb.gmra.mxu0 %vm372_vm1, %v878_v28 }
 0xc8d   : > { %v891_v29 = vpop.f32.mrf.mxu0 }
 0xc8e   : > { %v895_v30 = vmul.f32 %v891_v29, %v1853_v11  ;;  %v1052_v29 = vsub.f32 1.0, %v1390_v16 }
 0xc90   : > { %v896_v31 = vpack.c.bf16 %v895_v30, %v895_v30 }
 0xc92   : > { %1386 = vmatmul.msk.bf16.vlgmr.msra.gmra.mxu3 %vm427_vm2, %v896_v31 }
 0xc95   : > { %v893_v32 = vpop.f32.mrf.mxu0 }
 0xd15   : > { %v909_v33 = vpop.f32.mrf.mxu3 }
 0xd16   : > { %934 = vrot.lane.b32.xlu2 %v909_v33, %s1651_s30  ;;  %v913_v37 = vadd.f32 %v1383_v36, %v909_v33 }
 0xd18   : > { %v1387_v38 = vmul.f32 -1.442695, %v913_v37 }
 0xd1a   : > { %1520 = vpow2.f32 %v1387_v38 }
 0xd1d   : > { %v911_v35 = vpop.f32.mrf.mxu3 }
 0xd1e   : > { %954 = vperm.xlu2 %1488, %v1384_v34  }
 0xd20   : > { %v1521_v39 = vpop.eup %1520 }
 0xd21   : > { %v917_v40 = vadd.f32 1.0, %v1521_v39 }
 0xd23   : > { %1522 = vrcp.f32 %v917_v40  ;;  %v929_v46 = vand.u32 2147483648, %v917_v40  ;;  %vm923_vm10 = vweird.f32 %v917_v40  ;;  %v927_v47 = vand.u32 2147483647, %v917_v40 }
 0xd25   : > { %v930_v49 = vor.u32 1.1754944e-38, %v929_v46  ;;  %vm928_vm12 = vcmp.eq.f32.partialorder %v927_v47, 8.507059e+37 }
 0xd29   : > { %v1523_v41 = vpop.eup %1522 }
 0xd2a   : > { %v919_v42 = vmul.f32 %v1523_v41, %v917_v40  ;;  %vm924_vm9 = vweird.f32 %v1523_v41 }
 0xd2b   : > { %vm925_vm11 = vmor %vm923_vm10, %vm924_vm9 }
 0xd2c   : > { %v920_v43 = vsub.f32 1.0, %v919_v42 }
 0xd2e   : > { %v921_v44 = vmul.f32 %v1523_v41, %v920_v43 }
 0xd30   : > { %v922_v45 = vadd.f32 %v1523_v41, %v921_v44 }
 0xd32   : > { %v926_v48 = vsel %vm925_vm11, %v1523_v41, %v922_v45 }
 0xd33   : > { %v931_v51 = vsel %vm928_vm12, %v930_v49, %v926_v48  ;;  %v1396_v49 = vld [vmem:[%s1766_s27 + $0x38] sm:$0xff] }
 0xd34   : > { %v944_v57 = vsub.f32 1.0, %v931_v51  ;;  %v950_v59 = vmul.f32 %v931_v51, %v871_v27 }
 0xd70   : > { %v935_v50 = vpop.permute.xlu2 %934 }
 0xd71   : > { %v937_v52 = vmul.f32 %v935_v50, %v931_v51  ;;  %v1395_v51 = vld [vmem:[%s1761_s18 + $0x38] sm:$0xff] }
 0xd73   : > { %939 = vrot.lane.b32.xlu0 %v937_v52, %s1652_s9 }
 0xd78   : > { %v955_v1 = vpop.permute.xlu2 %954 }
 0xd7b   : > { %961 = vperm.xlu0 %1489, %v958_v53  }
 0xde5   : > { %v940_v54 = vpop.permute.xlu0 %939 }
 0xde6   : > { %v942_v55 = vadd.f32 %v1383_v36, %v940_v54 }
 0xde8   : > { %1524 = vtanh.f32 %v942_v55 }
 0xded   : > { %v962_v61 = vpop.permute.xlu0 %961 }
 0xdee   : > { %v1525_v56 = vpop.eup %1524  ;;  %v964_v63 = vmul.f32 %v962_v61, %v871_v27 }
 0xdef   : > { %946 = vrot.lane.b32.xlu1 %v1525_v56, %s1654_s13 }
 0xe61   : > { %v947_v58 = vpop.permute.xlu1 %946 }
 0xe62   : > { %v949_v60 = vmul.f32 %v947_v58, %v944_v57 }
 0xe64   : > { %v951_v62 = vadd.f32 %v950_v59, %v949_v60 }
 0xe66   : > { %v957_v3 = vmul.f32 %v955_v1, %v951_v62 }
 0xe68   : > { %v965_v0 = vadd.f32 %v964_v63, %v957_v3 }
 0xe6a   : > { %1388 = vst.msk [vmem:[%s1768_s28 + $0x28] sm:$0xff] %vm372_vm1, %v965_v0  ;;  %v972_v4 = vpack.c.bf16 %v965_v0, %v965_v0 }
 0xe6c   : > { %1391 = vmatmul.msk.bf16.vlgmr.msrb.gmra.mxu3 %vm372_vm1, %v972_v4  ;;  %v1146_v4 = vsub.f32 1.0, %v1396_v49 }
 0xeef   : > { %v985_v6 = vpop.f32.mrf.mxu3 }
 0xef0   : > { %v989_v12 = vmul.f32 %v985_v6, %v1853_v11 }
 0xef2   : > { %v990_v13 = vpack.c.bf16 %v989_v12, %v989_v12 }
 0xef4   : > { %1392 = vmatmul.msk.bf16.vlgmr.msra.gmra.mxu0 %vm427_vm2, %v990_v13 }
 0xef7   : > { %v987_v14 = vpop.f32.mrf.mxu3 }
 0xf71   : > { %v1003_v15 = vpop.f32.mrf.mxu0 }
 0xf72   : > { %1028 = vrot.lane.b32.xlu1 %v1003_v15, %s1651_s30  ;;  %v1007_v19 = vadd.f32 %v1389_v18, %v1003_v15 }
 0xf74   : > { %v1393_v20 = vmul.f32 -1.442695, %v1007_v19 }
 0xf76   : > { %1526 = vpow2.f32 %v1393_v20 }
 0xf79   : > { %v1005_v17 = vpop.f32.mrf.mxu0 }
 0xf7a   : > { %1048 = vperm.xlu1 %1487, %v1390_v16  }
 0xf7c   : > { %v1527_v21 = vpop.eup %1526 }
 0xf7d   : > { %v1011_v22 = vadd.f32 1.0, %v1527_v21 }
 0xf7f   : > { %1528 = vrcp.f32 %v1011_v22  ;;  %v1023_v25 = vand.u32 2147483648, %v1011_v22  ;;  %vm1017_vm14 = vweird.f32 %v1011_v22  ;;  %v1021_v8 = vand.u32 2147483647, %v1011_v22 }
 0xf81   : > { %v1024_v26 = vor.u32 1.1754944e-38, %v1023_v25  ;;  %vm1022_vm0 = vcmp.eq.f32.partialorder %v1021_v8, 8.507059e+37 }
 0xf85   : > { %v1529_v23 = vpop.eup %1528 }
 0xf86   : > { %v1013_v24 = vmul.f32 %v1529_v23, %v1011_v22  ;;  %vm1018_vm13 = vweird.f32 %v1529_v23 }
 0xf87   : > { %vm1019_vm15 = vmor %vm1017_vm14, %vm1018_vm13 }
 0xf88   : > { %v1014_v2 = vsub.f32 1.0, %v1013_v24 }
 0xf8a   : > { %v1015_v5 = vmul.f32 %v1529_v23, %v1014_v2 }
 0xf8c   : > { %v1016_v7 = vadd.f32 %v1529_v23, %v1015_v5 }
 0xf8e   : > { %v1020_v9 = vsel %vm1019_vm15, %v1529_v23, %v1016_v7 }
 0xf8f   : > { %v1025_v27 = vsel %vm1022_vm0, %v1024_v26, %v1020_v9 }
 0xf90   : > { %v1038_v33 = vsub.f32 1.0, %v1025_v27  ;;  %v1044_v35 = vmul.f32 %v1025_v27, %v965_v0 }
 0xfe4   : > { %v1029_v10 = vpop.permute.xlu1 %1028 }
 0xfe5   : > { %v1031_v28 = vmul.f32 %v1029_v10, %v1025_v27 }
 0xfe7   : > { %1033 = vrot.lane.b32.xlu2 %v1031_v28, %s1652_s9 }
 0xfec   : > { %v1049_v39 = vpop.permute.xlu1 %1048 }
 0xfef   : > { %1055 = vperm.xlu2 %1488, %v1052_v29  }
0x1041   : > { %v1034_v30 = vpop.permute.xlu2 %1033 }
0x1042   : > { %v1036_v31 = vadd.f32 %v1389_v18, %v1034_v30 }
0x1044   : > { %1530 = vtanh.f32 %v1036_v31 }
0x1049   : > { %v1056_v37 = vpop.permute.xlu2 %1055 }
0x104a   : > { %v1531_v32 = vpop.eup %1530  ;;  %v1058_v40 = vmul.f32 %v1056_v37, %v965_v0 }
0x104b   : > { %1040 = vrot.lane.b32.xlu0 %v1531_v32, %s1654_s13 }
0x10bd   : > { %v1041_v34 = vpop.permute.xlu0 %1040 }
0x10be   : > { %v1043_v36 = vmul.f32 %v1041_v34, %v1038_v33 }
0x10c0   : > { %v1045_v38 = vadd.f32 %v1044_v35, %v1043_v36 }
0x10c2   : > { %v1051_v41 = vmul.f32 %v1049_v39, %v1045_v38 }
0x10c4   : > { %v1059_v42 = vadd.f32 %v1058_v40, %v1051_v41 }
0x10c6   : > { %1394 = vst.msk [vmem:[%s1768_s28 + $0x30] sm:$0xff] %vm372_vm1, %v1059_v42  ;;  %v1066_v43 = vpack.c.bf16 %v1059_v42, %v1059_v42 }
0x10c8   : > { %1397 = vmatmul.msk.bf16.vlgmr.msrb.gmra.mxu2 %vm372_vm1, %v1066_v43 }
0x114b   : > { %v1079_v44 = vpop.f32.mrf.mxu2 }
0x114c   : > { %v1083_v45 = vmul.f32 %v1079_v44, %v1853_v11 }
0x114e   : > { %v1084_v46 = vpack.c.bf16 %v1083_v45, %v1083_v45 }
0x1150   : > { %1398 = vmatmul.msk.bf16.vlgmr.msra.gmra.mxu1 %vm427_vm2, %v1084_v46 }
0x1153   : > { %v1081_v47 = vpop.f32.mrf.mxu2 }
0x11cd   : > { %v1097_v48 = vpop.f32.mrf.mxu1 }
0x11ce   : > { %1122 = vrot.lane.b32.xlu0 %v1097_v48, %s1651_s30  ;;  %v1101_v52 = vadd.f32 %v1395_v51, %v1097_v48 }
0x11d0   : > { %v1399_v53 = vmul.f32 -1.442695, %v1101_v52 }
0x11d2   : > { %1532 = vpow2.f32 %v1399_v53 }
0x11d5   : > { %v1099_v50 = vpop.f32.mrf.mxu1 }
0x11d6   : > { %1142 = vperm.xlu0 %1489, %v1396_v49  }
0x11d8   : > { %v1533_v54 = vpop.eup %1532 }
0x11d9   : > { %v1105_v55 = vadd.f32 1.0, %v1533_v54 }
0x11db   : > { %1534 = vrcp.f32 %v1105_v55  ;;  %v1117_v60 = vand.u32 2147483648, %v1105_v55  ;;  %vm1111_vm3 = vweird.f32 %v1105_v55  ;;  %v1115_v61 = vand.u32 2147483647, %v1105_v55 }
0x11dd   : > { %v1118_v1 = vor.u32 1.1754944e-38, %v1117_v60  ;;  %vm1116_vm5 = vcmp.eq.f32.partialorder %v1115_v61, 8.507059e+37 }
0x11e1   : > { %v1535_v56 = vpop.eup %1534 }
0x11e2   : > { %v1107_v57 = vmul.f32 %v1535_v56, %v1105_v55  ;;  %vm1112_vm2 = vweird.f32 %v1535_v56 }
0x11e3   : > { %vm1113_vm4 = vmor %vm1111_vm3, %vm1112_vm2 }
0x11e4   : > { %v1108_v11 = vsub.f32 1.0, %v1107_v57 }
0x11e6   : > { %v1109_v58 = vmul.f32 %v1535_v56, %v1108_v11 }
0x11e8   : > { %v1110_v59 = vadd.f32 %v1535_v56, %v1109_v58 }
0x11ea   : > { %v1114_v62 = vsel %vm1113_vm4, %v1535_v56, %v1110_v59 }
0x11eb   : > { %v1119_v3 = vsel %vm1116_vm5, %v1118_v1, %v1114_v62 }
0x11ec   : > { %v1132_v14 = vsub.f32 1.0, %v1119_v3  ;;  %v1138_v16 = vmul.f32 %v1119_v3, %v1059_v42 }
0x1240   : > { %v1123_v63 = vpop.permute.xlu0 %1122 }
0x1241   : > { %v1125_v0 = vmul.f32 %v1123_v63, %v1119_v3 }
0x1243   : > { %1127 = vrot.lane.b32.xlu1 %v1125_v0, %s1652_s9 }
0x1248   : > { %v1143_v20 = vpop.permute.xlu0 %1142 }
0x124b   : > { %1149 = vperm.xlu1 %1487, %v1146_v4  }
0x12b5   : > { %v1128_v6 = vpop.permute.xlu1 %1127 }
0x12b6   : > { %v1130_v12 = vadd.f32 %v1395_v51, %v1128_v6 }
0x12b8   : > { %1536 = vtanh.f32 %v1130_v12 }
0x12bd   : > { %v1150_v18 = vpop.permute.xlu1 %1149 }
0x12be   : > { %v1537_v13 = vpop.eup %1536  ;;  %v1152_v21 = vmul.f32 %v1150_v18, %v1059_v42 }
0x12bf   : > { %1134 = vrot.lane.b32.xlu2 %v1537_v13, %s1654_s13 }
0x1319   : > { %v1135_v15 = vpop.permute.xlu2 %1134 }
0x131a   : > { %v1137_v17 = vmul.f32 %v1135_v15, %v1132_v14 }
0x131c   : > { %v1139_v19 = vadd.f32 %v1138_v16, %v1137_v17 }
0x131e   : > { %v1145_v22 = vmul.f32 %v1143_v20, %v1139_v19 }
0x131f   : > { %1160 = sbr.rel (%p1401_p13) target bundleno = 4901 (0x1325), region = 48 }
0x1320   : > { %v1153_v23 = vadd.f32 %v1152_v21, %v1145_v22 }
0x1322   : > { %1400 = vst.msk [vmem:[%s1768_s28 + $0x38] sm:$0xff] %vm372_vm1, %v1153_v23 }
0x1323   : > { %1156 = vst.msk [vmem:[#allocation2] sm:$0xff] %vm372_vm1, %v1153_v23 }
0x1324   : > { %1161 = vst.msk [vmem:[#allocation5] sm:$0xff] %vm372_vm1, %v1153_v23 }
0x1325 PF: > { %s1417_s18 = sshll.u32 %s1640_s24, 6  ;;  %s1176_s15 = sshll.u32 %s1768_s28, 4  ;;  %s1177_s15 = int_to_ptr.vmem [resolvable:$true] %s1176_s15 }
0x1326   : > { %s1175_s14 = scalar_lea.hbm %s2029_s5, %s1417_s18  ;;  %s1163_s19 = scalar_lea.sflag [#allocation4], %s304_s12 }
0x1327   : > { %s1178_s17 = sshll.u32 %s1175_s14, 4  ;;  %s1558_s24 = scalar_lea.hbm %s2029_s5, 128  ;;  %s1179_s17 = int_to_ptr.hbm [resolvable:$true] %s1178_s17 }
0x1328   : > { %s1552_s20 = sshra.s32 %s1179_s17, 4  ;;  %s1553_s20 = int_to_ptr.hbm [resolvable:$true] %s1552_s20 }
0x1329   : > { %s1554_s30 = scalar_lea.hbm %s1553_s20, 64  ;;  %p1559_p5 = scmp.lt.s32.totalorder %s1553_s20, %s2029_s5 }
0x132a   : > { %p1555_p0 = scmp.ne.s32.totalorder %s1553_s20, %s1554_s30  ;;  %p1560_p6 = scmp.lt.s32.totalorder %s1558_s24, %s1554_s30 }
0x132c   : > { %p1556_p1 = pnand %p1555_p0, %p1739_p4  ;;  %p1561_p7 = por %p1560_p6, %p1559_p5 }
0x132e   : > { %p1557_p3 = pneg %p1556_p1 }
0x1330   : > { %p1562_p9 = pnand %p1561_p7, %p1557_p3 }
0x1332   : > { %1565 = shalt.err (!%p1562_p9)
}
0x1333   : > { %s1655_s12 = smov 128   ;;  %s1656_s28 = smov 8  }
0x1334   : > { %1418 = dma.vmem_to_hbm [thread:$0]  (%p1739_p4), %s1177_s15, 1024, %s1179_s17, %s1163_s19, %s1655_s12, %s1655_s12, %s1656_s28  }
0x1335   : > { %s1195_s14 = sshll.u32 %s2030_s6, 4  ;;  %s1657_s9 = smov [#allocation5]   ;;  %s1196_s14 = int_to_ptr.hbm [resolvable:$true] %s1195_s14 }
0x1336   : > { %s1193_s13 = sshll.u32 %s1657_s9, 4  ;;  %s1194_s13 = int_to_ptr.vmem [resolvable:$true] %s1193_s13 }
0x1337   : > { %1420 = dma.vmem_to_hbm [thread:$0]  (%p1729_p2), %s1194_s13, 128, %s1196_s14, [#allocation6]  }
0x1338   : > { %1619 = dma.done.wait (%p1729_p2), [#allocation6], 128  }
0x1339   : > { %1621 = vsyncadd (%p1729_p2), [#allocation6], 4294967168 }
0x133a PF: > { %p1430_p4 = scmp.ge.s32.totalorder %s1648_s26, 2  ;;  %s1212_s0 = sand.u32 1, %s1628_s21  }
0x133b   : > { %s1213_s8 = scalar_lea.sflag [#allocation4], %s1212_s0 }
0x133c   : > { %p1425_p10 = pnand %p1430_p4, %p1746_p8 }
0x133e   : > { %p1426_p11 = pneg %p1425_p10 }
0x1340   : > { %1623 = dma.done.wait (%p1426_p11), %s1213_s8, 1024  }
0x1341   : > { %1625 = vsyncadd (%p1426_p11), %s1213_s8, 4294966272  ;;  %s21_s26 = sadd.s32 1, %s1648_s26   ;;  %s2036_s21 = smov %s1632_s22 }
0x1342   : > { %p18_p12 = scmp.ge.s32.totalorder %s21_s26, 4   ;;  %s2037_s22 = smov %s1636_s23 }
0x1343   : > { %s2038_s23 = smov %s1752_s11  ;;  %s2039_s24 = smov %s1644_s25 }
0x1344   : > { %s2040_s25 = smov %s2042_s29  ;;  %20 = sbr.rel (!%p18_p12) target bundleno = 7 (0x7), region = 119 }
0x1349   :  { %1219 = vsyncpa [#allocation4], 1 }
0x134a   :  { %1221 = vsyncpa [#allocation4 + $0x1], 1 }
0x134b   :  { %1222 = vsyncpa [#allocation6], 1 }

</bundles_post_ra>
